<compile_context>
chip_gen: v6e
topology: v6e:2x2x1
jax: 0.10.0
libtpu: 0.0.40
codegen_flags: <defaults>
</compile_context>

<pallas_src>
import functools

import jax
import jax.numpy as jnp
from jax.experimental import pallas as pl
from jax.experimental.pallas import tpu as pltpu


def _round_up(n, m):
    return ((n + m - 1) // m) * m


# ----------------------------------------------------------------------------
# Kernel
# ----------------------------------------------------------------------------
def _mlp_kernel(x_ref,
                w15_ref, b15_ref,      # fused [w1 | w5x], [b1 | b5]      (in, HP+OP)
                w25_ref, b25_ref,      # fused [w2 | w5h1], [b2 | 0]      (HP, HP+OP)
                w3_ref, b3_ref, w4_ref, b4_ref, w5h4_ref,
                out_ref, *, hp):
    x = x_ref[...]  # bf16 (TB, in_size)

    # layer1 + x@w5x fused into one N=(HP+OP) matmul; BN affine folded into w/b.
    f1 = jnp.dot(x, w15_ref[...], preferred_element_type=jnp.float32) + b15_ref[...]
    h1 = f1[:, :hp]
    h1 = h1 * h1                                   # power_x(1,2)
    acc = f1[:, hp:]                               # = x @ w5x + b5   (early layer-5 accum)
    h1b = h1.astype(jnp.bfloat16)

    # layer2 + h1@w5h1 fused.
    f2 = jnp.dot(h1b, w25_ref[...], preferred_element_type=jnp.float32) + b25_ref[...]
    h2 = f2[:, :hp]
    h2 = h2 * h2
    acc = acc + f2[:, hp:]

    # layer3
    h3 = (jnp.dot(h2.astype(jnp.bfloat16), w3_ref[...],
                  preferred_element_type=jnp.float32) + b3_ref[...])
    h3 = h3 * h3

    # layer4 (exp in f32 on the EUP)
    h4 = jnp.exp(jnp.dot(h3.astype(jnp.bfloat16), w4_ref[...],
                         preferred_element_type=jnp.float32) + b4_ref[...])

    # remaining layer-5 contribution
    acc = acc + jnp.dot(h4.astype(jnp.bfloat16), w5h4_ref[...],
                        preferred_element_type=jnp.float32)
    out_ref[...] = acc.astype(out_ref.dtype)


# ----------------------------------------------------------------------------
# Wrapper
# ----------------------------------------------------------------------------
def x1_x2_3_e_forward(x, prepared, out_size, block_rows=1024):
    """x: (B, in_size) f32. prepared: dict from prepare_params() (folded/fused/padded)."""
    B, in_size = x.shape
    HP = prepared["w3"].shape[0]          # padded hidden (multiple of 128)
    OP = prepared["w5h4"].shape[1]        # padded out    (multiple of 128)

    # Row tile: >=2 grid steps when possible (so v7x can use both TensorCores),
    # multiple of 16 (bf16 sublane packing), capped by block_rows.
    TB = min(block_rows, _round_up(max((B + 1) // 2, 1), 16))
    B_pad = _round_up(B, TB)
    if B_pad != B:
        x = jnp.pad(x, ((0, B_pad - B), (0, 0)))
    xb = x.astype(jnp.bfloat16)

    grid = (B_pad // TB,)

    def _const_spec(a):
        nd = a.ndim
        return pl.BlockSpec(a.shape, lambda i, _nd=nd: (0,) * _nd)

    p = prepared
    weight_args = (p["w15"], p["b15"], p["w25"], p["b25"],
                   p["w3"], p["b3"], p["w4"], p["b4"], p["w5h4"])

    in_specs = [pl.BlockSpec((TB, in_size), lambda i: (i, 0))]   # x: row-tiled
    in_specs += [_const_spec(a) for a in weight_args]            # weights: resident
    out_specs = pl.BlockSpec((TB, OP), lambda i: (i, 0))

    # Advisory cost hint for the XLA scheduler.
    flops = 2 * B_pad * (in_size * (HP + OP)        # fused layer1 + w5x
                         + HP * (HP + OP)           # fused layer2 + w5h1
                         + 2 * HP * HP              # layer3, layer4
                         + HP * OP)                 # w5h4
    transcendentals = B_pad * HP
    bytes_accessed = (sum(int(a.size) * a.dtype.itemsize for a in weight_args)
                      + B_pad * in_size * 2          # x (bf16)
                      + B_pad * OP * 2)              # out (bf16)

    out = pl.pallas_call(
        functools.partial(_mlp_kernel, hp=HP),
        out_shape=jax.ShapeDtypeStruct((B_pad, OP), jnp.bfloat16),
        grid=grid,
        in_specs=in_specs,
        out_specs=out_specs,
        compiler_params=pltpu.CompilerParams(
            dimension_semantics=("parallel",),       # shards rows across TCs on v7x
            vmem_limit_bytes=32 * 1024 * 1024,
        ),
        cost_estimate=pl.CostEstimate(
            flops=flops,
            transcendentals=transcendentals,
            bytes_accessed=bytes_accessed,
        ),
    )(xb, *weight_args)

    # Padded block is what the kernel writes; the slice here only serves the
    # module contract (B, out_size). Fuse into the consumer when possible.
    return out[:B, :out_size]


# ----------------------------------------------------------------------------
# Host-side parameter construction
# ----------------------------------------------------------------------------
def make_params(key, in_size, hidden_size, out_size, bn_eps=1e-5):
    """Raw synthetic parameters. Linear weights stored pre-transposed as (in, out)."""
    ks = jax.random.split(key, 16)
    p = {}

    def linear(kw, kb, fan_in, fan_out):
        bound = 1.0 / jnp.sqrt(fan_in)
        w = jax.random.uniform(kw, (fan_in, fan_out), jnp.float32, -bound, bound)
        b = jax.random.uniform(kb, (1, fan_out), jnp.float32, -bound, bound)
        return w, b

    def bn_fold(kg, kb, km, kv, feat):
        gamma = 1.0 + 0.1 * jax.random.normal(kg, (1, feat), jnp.float32)
        beta = 0.1 * jax.random.normal(kb, (1, feat), jnp.float32)
        mean = 0.1 * jax.random.normal(km, (1, feat), jnp.float32)
        var = jnp.abs(1.0 + 0.1 * jax.random.normal(kv, (1, feat), jnp.float32))
        s = gamma / jnp.sqrt(var + bn_eps)
        t = beta - mean * s
        return s, t

    dims = [(in_size, hidden_size), (hidden_size, hidden_size),
            (hidden_size, hidden_size), (hidden_size, hidden_size)]
    for i, (fi, fo) in enumerate(dims, start=1):
        kw, kb = jax.random.split(ks[i - 1])
        w, b = linear(kw, kb, fi, fo)
        kg, kb2, km, kv = jax.random.split(ks[3 + i], 4)
        s, t = bn_fold(kg, kb2, km, kv, fo)
        p[f"w{i}"], p[f"b{i}"] = w, b
        p[f"s{i}"], p[f"t{i}"] = s, t

    kw5, kb5 = jax.random.split(ks[10])
    cat_in = in_size + hidden_size + hidden_size
    w5, b5 = linear(kw5, kb5, cat_in, out_size)
    p["w5x"] = w5[:in_size]
    p["w5h1"] = w5[in_size:in_size + hidden_size]
    p["w5h4"] = w5[in_size + hidden_size:]
    p["b5"] = b5
    return p


def prepare_params(raw, in_size, hidden_size, out_size):
    """Fold BN (eval) into weights/bias, fuse [w1|w5x] and [w2|w5h1], zero-pad
    features to 128 lanes, cast weights to bf16 (biases stay f32)."""
    HP = _round_up(hidden_size, 128)
    OP = _round_up(out_size, 128)

    def pad2(a, rows, cols):
        return jnp.pad(a, ((0, rows - a.shape[0]), (0, cols - a.shape[1])))

    def fold(w, b, s, t):
        return w * s, b * s + t     # column-scale of (in, out) weights

    w1f, b1f = fold(raw["w1"], raw["b1"], raw["s1"], raw["t1"])
    w2f, b2f = fold(raw["w2"], raw["b2"], raw["s2"], raw["t2"])
    w3f, b3f = fold(raw["w3"], raw["b3"], raw["s3"], raw["t3"])
    w4f, b4f = fold(raw["w4"], raw["b4"], raw["s4"], raw["t4"])

    out = {}
    # Fused layer1 + x@w5x  (N = HP + OP = 256 -> full MXU width on v6e/v7x).
    out["w15"] = jnp.concatenate(
        [pad2(w1f, in_size, HP), pad2(raw["w5x"], in_size, OP)],
        axis=1).astype(jnp.bfloat16)
    out["b15"] = jnp.concatenate(
        [pad2(b1f, 1, HP), pad2(raw["b5"], 1, OP)], axis=1).astype(jnp.float32)

    # Fused layer2 + h1@w5h1.
    out["w25"] = jnp.concatenate(
        [pad2(w2f, HP, HP), pad2(raw["w5h1"], HP, OP)],
        axis=1).astype(jnp.bfloat16)
    out["b25"] = jnp.concatenate(
        [pad2(b2f, 1, HP), jnp.zeros((1, OP), jnp.float32)], axis=1)

    out["w3"] = pad2(w3f, HP, HP).astype(jnp.bfloat16)
    out["b3"] = pad2(b3f, 1, HP).astype(jnp.float32)
    out["w4"] = pad2(w4f, HP, HP).astype(jnp.bfloat16)
    out["b4"] = pad2(b4f, 1, HP).astype(jnp.float32)

    # Padded rows of w5h4 are zero, so padded layer-4 lanes (exp(0)=1) contribute
    # nothing to the output.
    out["w5h4"] = pad2(raw["w5h4"], HP, OP).astype(jnp.bfloat16)
    return out


# ----------------------------------------------------------------------------
# References
# ----------------------------------------------------------------------------
def _reference_f32(x, p):
    def lin_bn(h, w, b, s, t):
        return (h @ w + b) * s + t
    h1 = lin_bn(x, p["w1"], p["b1"], p["s1"], p["t1"]) ** 2
    h2 = lin_bn(h1, p["w2"], p["b2"], p["s2"], p["t2"]) ** 2
    h3 = lin_bn(h2, p["w3"], p["b3"], p["s3"], p["t3"]) ** 2
    h4 = jnp.exp(lin_bn(h3, p["w4"], p["b4"], p["s4"], p["t4"]))
    return x @ p["w5x"] + h1 @ p["w5h1"] + h4 @ p["w5h4"] + p["b5"]


def _reference_bf16(x, pp, hp, out_size):
    """Same fused/folded/padded params and bf16 matmul precision as the kernel."""
    xb = x.astype(jnp.bfloat16)
    f1 = jnp.dot(xb, pp["w15"], preferred_element_type=jnp.float32) + pp["b15"]
    h1 = f1[:, :hp] ** 2
    acc = f1[:, hp:]
    h1b = h1.astype(jnp.bfloat16)
    f2 = jnp.dot(h1b, pp["w25"], preferred_element_type=jnp.float32) + pp["b25"]
    h2 = f2[:, :hp] ** 2
    acc = acc + f2[:, hp:]
    h3 = (jnp.dot(h2.astype(jnp.bfloat16), pp["w3"],
                  preferred_element_type=jnp.float32) + pp["b3"]) ** 2
    h4 = jnp.exp(jnp.dot(h3.astype(jnp.bfloat16), pp["w4"],
                         preferred_element_type=jnp.float32) + pp["b4"])
    acc = acc + jnp.dot(h4.astype(jnp.bfloat16), pp["w5h4"],
                        preferred_element_type=jnp.float32)
    return acc[:, :out_size]


if __name__ == "__main__":
    B, in_size, hidden_size, out_size = 512, 16, 32, 8
    key = jax.random.PRNGKey(0)
    kx, kp = jax.random.split(key)
    # Modest input scale: the x**2 -> x**2 -> x**2 -> exp chain is numerically
    # explosive for large activations (true of the PyTorch module as well).
    x = 0.5 * jax.random.normal(kx, (B, in_size), jnp.float32)

    raw = make_params(kp, in_size, hidden_size, out_size)
    prepared = prepare_params(raw, in_size, hidden_size, out_size)
    HP = prepared["w3"].shape[0]

    out = x1_x2_3_e_forward(x, prepared, out_size)
    out = jax.block_until_ready(out)
    assert out.shape == (B, out_size)
    out_f32 = out.astype(jnp.float32)

    # Check vs. a JAX reference with identical fused weights / bf16-f32 precision
    # (tolerance covers the final bf16 output rounding).
    ref_bf16 = _reference_bf16(x, prepared, HP, out_size)
    assert jnp.allclose(out_f32, ref_bf16, atol=5e-2, rtol=2e-2), \
        "mismatch vs bf16-matched reference"

    # Sanity check vs. the pure-f32 reference (tolerance covers bf16 MXU precision).
    ref_f32 = _reference_f32(x, raw)
    assert jnp.allclose(out_f32, ref_f32, atol=1.5e-1, rtol=1.5e-1), \
        "mismatch vs f32 reference"

    print("KERNEL_OK")
</pallas_src>

<mosaic_0001>
module attributes {stable_mosaic.version = 11 : i64} {
  func.func @_mlp_kernel(%arg0: i32, %arg1: memref<256x16xbf16, #tpu.memory_space<vmem>>, %arg2: memref<16x256xbf16, #tpu.memory_space<vmem>>, %arg3: memref<1x256xf32, #tpu.memory_space<vmem>>, %arg4: memref<128x256xbf16, #tpu.memory_space<vmem>>, %arg5: memref<1x256xf32, #tpu.memory_space<vmem>>, %arg6: memref<128x128xbf16, #tpu.memory_space<vmem>>, %arg7: memref<1x128xf32, #tpu.memory_space<vmem>>, %arg8: memref<128x128xbf16, #tpu.memory_space<vmem>>, %arg9: memref<1x128xf32, #tpu.memory_space<vmem>>, %arg10: memref<128x128xbf16, #tpu.memory_space<vmem>>, %arg11: memref<256x128xbf16, #tpu.memory_space<vmem>>) attributes {dimension_semantics = [#tpu.dimension_semantics<parallel>], iteration_bounds = array<i64: 2>, scalar_prefetch = 0 : i64, scratch_operands = 0 : i64, tpu.core_type = #tpu.core_type<tc>, window_params = [{transform_indices = @transform_0, window_bounds = array<i64: 256, 16>}, {pipeline_mode = #tpu.pipeline_mode<synchronous>, transform_indices = @transform_1, window_bounds = array<i64: 16, 256>}, {pipeline_mode = #tpu.pipeline_mode<synchronous>, transform_indices = @transform_2, window_bounds = array<i64: 1, 256>}, {pipeline_mode = #tpu.pipeline_mode<synchronous>, transform_indices = @transform_3, window_bounds = array<i64: 128, 256>}, {pipeline_mode = #tpu.pipeline_mode<synchronous>, transform_indices = @transform_4, window_bounds = array<i64: 1, 256>}, {pipeline_mode = #tpu.pipeline_mode<synchronous>, transform_indices = @transform_5, window_bounds = array<i64: 128, 128>}, {pipeline_mode = #tpu.pipeline_mode<synchronous>, transform_indices = @transform_6, window_bounds = array<i64: 1, 128>}, {pipeline_mode = #tpu.pipeline_mode<synchronous>, transform_indices = @transform_7, window_bounds = array<i64: 128, 128>}, {pipeline_mode = #tpu.pipeline_mode<synchronous>, transform_indices = @transform_8, window_bounds = array<i64: 1, 128>}, {pipeline_mode = #tpu.pipeline_mode<synchronous>, transform_indices = @transform_9, window_bounds = array<i64: 128, 128>}, {transform_indices = @transform_10, window_bounds = array<i64: 256, 128>}]} {
    %c0 = arith.constant 0 : index
    %c0_0 = arith.constant 0 : index
    %0 = vector.load %arg1[%c0, %c0_0] : memref<256x16xbf16, #tpu.memory_space<vmem>>, vector<256x16xbf16>
    %c0_1 = arith.constant 0 : index
    %c0_2 = arith.constant 0 : index
    %1 = vector.load %arg2[%c0_1, %c0_2] : memref<16x256xbf16, #tpu.memory_space<vmem>>, vector<16x256xbf16>
    %cst = arith.constant dense<0.000000e+00> : vector<256x256xf32>
    %2 = tpu.matmul %0, %1, %cst {dimension_numbers = #tpu.dot_dimension_numbers<[1], [0], [0], [1], [0, 0, 1, 1], [], []>} : vector<256x16xbf16>, vector<16x256xbf16>, vector<256x256xf32> -> vector<256x256xf32>
    %c0_3 = arith.constant 0 : index
    %c0_4 = arith.constant 0 : index
    %3 = vector.load %arg3[%c0_3, %c0_4] : memref<1x256xf32, #tpu.memory_space<vmem>>, vector<1x256xf32>
    %4 = vector.broadcast %3 : vector<1x256xf32> to vector<256x256xf32>
    %5 = arith.addf %2, %4 : vector<256x256xf32>
    %6 = vector.extract_strided_slice %5 {offsets = [0, 0], sizes = [256, 128], strides = [1, 1]} : vector<256x256xf32> to vector<256x128xf32>
    %7 = arith.mulf %6, %6 : vector<256x128xf32>
    %8 = vector.extract_strided_slice %5 {offsets = [0, 128], sizes = [256, 128], strides = [1, 1]} : vector<256x256xf32> to vector<256x128xf32>
    %9 = arith.truncf %7 : vector<256x128xf32> to vector<256x128xbf16>
    %c0_5 = arith.constant 0 : index
    %c0_6 = arith.constant 0 : index
    %10 = vector.load %arg4[%c0_5, %c0_6] : memref<128x256xbf16, #tpu.memory_space<vmem>>, vector<128x256xbf16>
    %cst_7 = arith.constant dense<0.000000e+00> : vector<256x256xf32>
    %11 = tpu.matmul %9, %10, %cst_7 {dimension_numbers = #tpu.dot_dimension_numbers<[1], [0], [0], [1], [0, 0, 1, 1], [], []>} : vector<256x128xbf16>, vector<128x256xbf16>, vector<256x256xf32> -> vector<256x256xf32>
    %c0_8 = arith.constant 0 : index
    %c0_9 = arith.constant 0 : index
    %12 = vector.load %arg5[%c0_8, %c0_9] : memref<1x256xf32, #tpu.memory_space<vmem>>, vector<1x256xf32>
    %13 = vector.broadcast %12 : vector<1x256xf32> to vector<256x256xf32>
    %14 = arith.addf %11, %13 : vector<256x256xf32>
    %15 = vector.extract_strided_slice %14 {offsets = [0, 0], sizes = [256, 128], strides = [1, 1]} : vector<256x256xf32> to vector<256x128xf32>
    %16 = arith.mulf %15, %15 : vector<256x128xf32>
    %17 = vector.extract_strided_slice %14 {offsets = [0, 128], sizes = [256, 128], strides = [1, 1]} : vector<256x256xf32> to vector<256x128xf32>
    %18 = arith.addf %8, %17 : vector<256x128xf32>
    %19 = arith.truncf %16 : vector<256x128xf32> to vector<256x128xbf16>
    %c0_10 = arith.constant 0 : index
    %c0_11 = arith.constant 0 : index
    %20 = vector.load %arg6[%c0_10, %c0_11] : memref<128x128xbf16, #tpu.memory_space<vmem>>, vector<128x128xbf16>
    %cst_12 = arith.constant dense<0.000000e+00> : vector<256x128xf32>
    %21 = tpu.matmul %19, %20, %cst_12 {dimension_numbers = #tpu.dot_dimension_numbers<[1], [0], [0], [1], [0, 0, 1, 1], [], []>} : vector<256x128xbf16>, vector<128x128xbf16>, vector<256x128xf32> -> vector<256x128xf32>
    %c0_13 = arith.constant 0 : index
    %c0_14 = arith.constant 0 : index
    %22 = vector.load %arg7[%c0_13, %c0_14] : memref<1x128xf32, #tpu.memory_space<vmem>>, vector<1x128xf32>
    %23 = vector.broadcast %22 : vector<1x128xf32> to vector<256x128xf32>
    %24 = arith.addf %21, %23 : vector<256x128xf32>
    %25 = arith.mulf %24, %24 : vector<256x128xf32>
    %26 = arith.truncf %25 : vector<256x128xf32> to vector<256x128xbf16>
    %c0_15 = arith.constant 0 : index
    %c0_16 = arith.constant 0 : index
    %27 = vector.load %arg8[%c0_15, %c0_16] : memref<128x128xbf16, #tpu.memory_space<vmem>>, vector<128x128xbf16>
    %cst_17 = arith.constant dense<0.000000e+00> : vector<256x128xf32>
    %28 = tpu.matmul %26, %27, %cst_17 {dimension_numbers = #tpu.dot_dimension_numbers<[1], [0], [0], [1], [0, 0, 1, 1], [], []>} : vector<256x128xbf16>, vector<128x128xbf16>, vector<256x128xf32> -> vector<256x128xf32>
    %c0_18 = arith.constant 0 : index
    %c0_19 = arith.constant 0 : index
    %29 = vector.load %arg9[%c0_18, %c0_19] : memref<1x128xf32, #tpu.memory_space<vmem>>, vector<1x128xf32>
    %30 = vector.broadcast %29 : vector<1x128xf32> to vector<256x128xf32>
    %31 = arith.addf %28, %30 : vector<256x128xf32>
    %32 = math.exp %31 : vector<256x128xf32>
    %33 = arith.truncf %32 : vector<256x128xf32> to vector<256x128xbf16>
    %c0_20 = arith.constant 0 : index
    %c0_21 = arith.constant 0 : index
    %34 = vector.load %arg10[%c0_20, %c0_21] : memref<128x128xbf16, #tpu.memory_space<vmem>>, vector<128x128xbf16>
    %cst_22 = arith.constant dense<0.000000e+00> : vector<256x128xf32>
    %35 = tpu.matmul %33, %34, %cst_22 {dimension_numbers = #tpu.dot_dimension_numbers<[1], [0], [0], [1], [0, 0, 1, 1], [], []>} : vector<256x128xbf16>, vector<128x128xbf16>, vector<256x128xf32> -> vector<256x128xf32>
    %36 = arith.addf %18, %35 : vector<256x128xf32>
    %37 = arith.truncf %36 : vector<256x128xf32> to vector<256x128xbf16>
    %c0_23 = arith.constant 0 : index
    %c0_24 = arith.constant 0 : index
    %38 = vector.load %arg11[%c0_23, %c0_24] : memref<256x128xbf16, #tpu.memory_space<vmem>>, vector<256x128xbf16>
    tpu.vector_store %arg11[%c0_23, %c0_24], %37 {strides = array<i32>} : memref<256x128xbf16, #tpu.memory_space<vmem>>, vector<256x128xbf16>,
    return
  }
  func.func @transform_0(%arg0: i32) -> (i32, i32) {
    %c0_i32 = arith.constant 0 : i32
    %c0_i32_0 = arith.constant 0 : i32
    return %arg0, %c0_i32 : i32, i32
  }
  func.func @transform_1(%arg0: i32) -> (i32, i32) {
    %c0_i32 = arith.constant 0 : i32
    %c0_i32_0 = arith.constant 0 : i32
    %c0_i32_1 = arith.constant 0 : i32
    return %c0_i32, %c0_i32_0 : i32, i32
  }
  func.func @transform_2(%arg0: i32) -> (i32, i32) {
    %c0_i32 = arith.constant 0 : i32
    %c0_i32_0 = arith.constant 0 : i32
    %c0_i32_1 = arith.constant 0 : i32
    return %c0_i32, %c0_i32_0 : i32, i32
  }
  func.func @transform_3(%arg0: i32) -> (i32, i32) {
    %c0_i32 = arith.constant 0 : i32
    %c0_i32_0 = arith.constant 0 : i32
    %c0_i32_1 = arith.constant 0 : i32
    return %c0_i32, %c0_i32_0 : i32, i32
  }
  func.func @transform_4(%arg0: i32) -> (i32, i32) {
    %c0_i32 = arith.constant 0 : i32
    %c0_i32_0 = arith.constant 0 : i32
    %c0_i32_1 = arith.constant 0 : i32
    return %c0_i32, %c0_i32_0 : i32, i32
  }
  func.func @transform_5(%arg0: i32) -> (i32, i32) {
    %c0_i32 = arith.constant 0 : i32
    %c0_i32_0 = arith.constant 0 : i32
    %c0_i32_1 = arith.constant 0 : i32
    return %c0_i32, %c0_i32_0 : i32, i32
  }
  func.func @transform_6(%arg0: i32) -> (i32, i32) {
    %c0_i32 = arith.constant 0 : i32
    %c0_i32_0 = arith.constant 0 : i32
    %c0_i32_1 = arith.constant 0 : i32
    return %c0_i32, %c0_i32_0 : i32, i32
  }
  func.func @transform_7(%arg0: i32) -> (i32, i32) {
    %c0_i32 = arith.constant 0 : i32
    %c0_i32_0 = arith.constant 0 : i32
    %c0_i32_1 = arith.constant 0 : i32
    return %c0_i32, %c0_i32_0 : i32, i32
  }
  func.func @transform_8(%arg0: i32) -> (i32, i32) {
    %c0_i32 = arith.constant 0 : i32
    %c0_i32_0 = arith.constant 0 : i32
    %c0_i32_1 = arith.constant 0 : i32
    return %c0_i32, %c0_i32_0 : i32, i32
  }
  func.func @transform_9(%arg0: i32) -> (i32, i32) {
    %c0_i32 = arith.constant 0 : i32
    %c0_i32_0 = arith.constant 0 : i32
    %c0_i32_1 = arith.constant 0 : i32
    return %c0_i32, %c0_i32_0 : i32, i32
  }
  func.func @transform_10(%arg0: i32) -> (i32, i32) {
    %c0_i32 = arith.constant 0 : i32
    %c0_i32_0 = arith.constant 0 : i32
    return %arg0, %c0_i32 : i32, i32
  }
}

</mosaic_0001>

<bundles_post_ra>
// kernel: tpu_custom_call.1
= control target key start
LH: loop header
LB: loop body
LE: loop exit
PB: predicated region body
PF: predicated region fallthrough
CT: control target
= control target key end

     0   :  { %15 = vsyncpa [#allocation3], 0  ;;  %s3822_s0 = inlined_call_operand.vmem [shape: bf16[512,16], index: 0, kind: input, shape index: {}]   ;;  %s3823_s1 = inlined_call_operand.vmem [shape: bf16[16,256], index: 1, kind: input, shape index: {}]   ;;  %s3824_s2 = inlined_call_operand.vmem [shape: f32[1,256], index: 2, kind: input, shape index: {}]   ;;  %s3825_s3 = inlined_call_operand.vmem [shape: bf16[128,256], index: 3, kind: input, shape index: {}]   ;;  %s3826_s4 = inlined_call_operand.vmem [shape: f32[1,256], index: 4, kind: input, shape index: {}]   ;;  %s3827_s5 = inlined_call_operand.vmem [shape: bf16[128,128], index: 5, kind: input, shape index: {}]   ;;  %s3828_s6 = inlined_call_operand.vmem [shape: f32[1,128], index: 6, kind: input, shape index: {}]   ;;  %s3829_s7 = inlined_call_operand.vmem [shape: bf16[128,128], index: 7, kind: input, shape index: {}]   ;;  %s3830_s8 = inlined_call_operand.vmem [shape: f32[1,128], index: 8, kind: input, shape index: {}]   ;;  %s3831_s9 = inlined_call_operand.hbm [shape: bf16[128,128], index: 9, kind: input, shape index: {}]   ;;  %s3832_s10 = inlined_call_operand.hbm [shape: bf16[512,128], index: 10, kind: output, shape index: {}]  }
   0x1   :  { %16 = vsyncpa [#allocation4], 0 }
   0x2   :  { %18 = vsyncpa [#allocation4 + $0x1], 0  ;;  %s3089_s13 = smov 0   ;;  %s3091_s14 = smov 0  }
   0x3   :  { %s3093_s15 = smov 0   ;;  %s3095_s16 = smov 0  }
   0x4 LB: > { %s3110_s17 = sadd.s32 4294967295, %s3025_s16   ;;  %s2281_s18 = sadd.s32 4294967294, %s3025_s16   ;;  %s3025_s16 = sphi %s3095_s16, %s3840_s16   ;;  %s3021_s15 = sphi %s3093_s15, %s3839_s15   ;;  %s3017_s14 = sphi %s3091_s14, %s3838_s14   ;;  %s3013_s13 = sphi %s3089_s13, %s3837_s13  }
   0x5   : > { %s3114_s19 = sadd.s32 1, %s3025_s16   ;;  %s246_s20 = sadd.s32 1, %s3021_s15 }
   0x6   : > { %s243_s21 = ssub.s32 %s3025_s16, %s3114_s19  ;;  %p256_p0 = scmp.ne.s32.totalorder %s3021_s15, %s3017_s14 }
   0x7   : > { %p244_p1 = scmp.eq.s32.totalorder %s243_s21, 0  ;;  %p257_p2 = scmp.eq.s32.totalorder %s3110_s17, 1 }
   0x8   : > { %p262_p3 = scmp.ne.s32.totalorder %s3017_s14, %s3013_s13  ;;  %p263_p4 = scmp.eq.s32.totalorder %s2281_s18, 1 }
   0x9   : > { %s3125_s22 = scalar_select %p244_p1, %s3021_s15, %s246_s20  }
   0xa   : > { %p3127_p5 = por %p257_p2, %p256_p0  ;;  %p3131_p6 = por %p263_p4, %p262_p3 }
   0xb   : > { %p2282_p7 = scmp.ge.s32.totalorder %s3025_s16, 1  ;;  %p270_p8 = scmp.lt.s32.totalorder %s3025_s16, 3 }
   0xc   : > { %s3834_s24 = scalar_select %p3131_p6, 1, 0 }
   0xd   : > { %p2763_p9 = scmp.eq.s32.totalorder %s3110_s17, 0  ;;  %p3138_p10 = pnand %p2282_p7, %p270_p8 }
   0xe   : > { %s3027_s26 = smov [#allocation2]  }
   0xf   : > { %s306_s27 = sshll.u32 %s3027_s26, 4  ;;  %p2755_p11 = pneg %p3138_p10  ;;  %s307_s27 = int_to_ptr.vmem [resolvable:$true] %s306_s27 }
  0x10   : > { %s2946_s28 = scalar_lea.vmem %s307_s27, 1024  ;;  %p2954_p3 = scmp.lt.s32.totalorder %s307_s27, %s307_s27 }
  0x11   : > { %p2756_p12 = pnand %p2763_p9, %p2755_p11  ;;  %p2947_p0 = scmp.ne.s32.totalorder %s307_s27, %s2946_s28 }
  0x12   : > { %p2955_p4 = scmp.lt.s32.totalorder %s2946_s28, %s2946_s28 }
  0x13   : > { %p2937_p13 = pneg %p2756_p12 }
  0x14   : > { %p2956_p6 = por %p2955_p4, %p2954_p3 }
  0x15   : > { %p2949_p1 = pnand %p2947_p0, %p2937_p13 }
  0x17   : > { %p2950_p2 = pneg %p2949_p1 }
  0x19   : > { %p2957_p7 = pnand %p2956_p6, %p2950_p2 }
  0x1b   : > { %2960 = shalt.err (!%p2957_p7)
}
  0x1c   : > { %s3028_s29 = smov 64   ;;  %s3029_s30 = smov 4  }
  0x1d   : > { %2758 = dma.hbm_to_vmem [thread:$0]  (!%p2756_p12), %s3831_s9, 1024, %s307_s27, [#allocation3], %s3028_s29, %s3028_s29, %s3029_s30  }
  0x1e   : > { %331 = sbr.rel (%p3138_p10) target bundleno = 1212 (0x4bc), region = 60 }
  0x23   : > { %3004 = dma.done.wait (%p2763_p9), [#allocation3], 1024  }
  0x24   : > { %3006 = vsyncadd (%p2763_p9), [#allocation3], 4294966272  ;;  %s2288_s18 = sshll.u32 %s3110_s17, 5  ;;  %v3030_v0 = vmov 0   ;;  %v2804_v1 = vld [vmem:[%s3823_s1 + $0x4] ss:$8 sps:$4 sm:$0xff]   ;;  %v413_v35 = vlaneseq }
  0x25   : > { %594 = vmatprep.mubr.bf16.mxu0 %v3030_v0  ;;  %p370_p6 = scmp.lt.s32.totalorder %s2288_s18, 63  ;;  %714 = vmatprep.mubr.bf16.mxu1 %v3030_v0  ;;  %v2806_v2 = vld [vmem:[%s3823_s1] ss:$8 sps:$4 sm:$0xff]   ;;  %vm513_vm0 = vcmask 130048   ;;  %v2823_v7 = vld [vmem:[%s3825_s3 + $0x70] ss:$8 sps:$4 sm:$0xff]  }
  0x26   : > { %576 = vmatprep.subr.bf16.mxu0 %v2804_v1  ;;  %2747 = vmatprep.subr.bf16.mxu1 %v2804_v1  ;;  %v2825_v8 = vld [vmem:[%s3825_s3 + $0x74] ss:$8 sps:$4 sm:$0xff]   ;;  %v2828_v9 = vld [vmem:[%s3825_s3 + $0x64] ss:$8 sps:$4 sm:$0xff]   ;;  %v2826_v11 = vld [vmem:[%s3825_s3 + $0x60] ss:$8 sps:$4 sm:$0xff]  }
  0x27   : > { %s3842_s18 = smov (!%p370_p6, %s2288_s18), 63  ;;  %577 = vmatpush1.bf16.msra.mxu0 %v2806_v2  ;;  %2748 = vmatpush1.bf16.msra.mxu1 %v2806_v2  ;;  %v2831_v12 = vld [vmem:[%s3825_s3 + $0x54] ss:$8 sps:$4 sm:$0xff]   ;;  %v2829_v14 = vld [vmem:[%s3825_s3 + $0x50] ss:$8 sps:$4 sm:$0xff]   ;;  %v3264_v36 = vshrl.u32 %v413_v35, 7 }
  0x28   : > { %s2289_s20 = sshll.u32 %s3842_s18, 2  ;;  %911 = vmatprep.subr.bf16.mxu1 %v2825_v8  ;;  %v2834_v15 = vld [vmem:[%s3825_s3 + $0x44] ss:$8 sps:$4 sm:$0xff]   ;;  %v2832_v17 = vld [vmem:[%s3825_s3 + $0x40] ss:$8 sps:$4 sm:$0xff]   ;;  %v2847_v43 = vld [vmem:[%s3827_s5 + $0x38] sm:$0xff]  }
  0x29   : > { %s3161_s25 = scalar_lea.vmem %s3822_s0, %s2289_s20  ;;  %v2837_v18 = vld [vmem:[%s3825_s3 + $0x34] ss:$8 sps:$4 sm:$0xff]   ;;  %v2835_v19 = vld [vmem:[%s3825_s3 + $0x30] ss:$8 sps:$4 sm:$0xff]   ;;  %v2840_v21 = vld [vmem:[%s3825_s3 + $0x24] ss:$8 sps:$4 sm:$0xff]   ;;  %2603 = vmatprep.subr.bf16.mxu0 %v2847_v43 }
  0x2a   : > { %v2807_v3 = vld [vmem:[%s3161_s25] sm:$0xff]   ;;  %v2808_v4 = vld [vmem:[%s3161_s25 + $0x8] sm:$0xff]   ;;  %v2809_v6 = vld [vmem:[%s3161_s25 + $0x10] sm:$0xff]   ;;  %v415_v37 = vsub.s32 0, %v3264_v36  ;;  %s366_s29 = sand.u32 1, %s3017_s14   ;;  %s2435_s12 = sshll.u32 %s3110_s17, 11 }
  0x2b   : > { %2308 = vmatmul.mubr.msk.bf16.vlgmr.msra.gmra.mxu0 %vm513_vm0, %v2807_v3  ;;  %v2819_v5 = vld [vmem:[%s3161_s25 + $0x60] sm:$0xff]   ;;  %v2820_v10 = vld [vmem:[%s3161_s25 + $0x68] sm:$0xff]   ;;  %v2810_v13 = vld [vmem:[%s3161_s25 + $0x18] sm:$0xff]   ;;  %s2287_s30 = sshll.u32 %s366_s29, 7  ;;  %s3774_s21 = scalar_lea.hbm %s3832_s10, %s2435_s12 }
  0x2c   : > { %604 = vmatprep.mubr.bf16.mxu0 %v3030_v0  ;;  %2320 = vmatmul.mubr.msk.bf16.vlgmr.msra.gmra.mxu1 %vm513_vm0, %v2819_v5  ;;  %v2821_v16 = vld [vmem:[%s3161_s25 + $0x70] sm:$0xff]   ;;  %v2811_v20 = vld [vmem:[%s3161_s25 + $0x20] sm:$0xff]   ;;  %v2822_v22 = vld [vmem:[%s3161_s25 + $0x78] sm:$0xff]   ;;  %s3719_s11 = scalar_lea.vmem [#allocation5], %s2287_s30  ;;  %s3782_s17 = scalar_lea.sflag [#allocation4], %s366_s29 }
  0x2d   : > { %724 = vmatprep.mubr.bf16.mxu1 %v3030_v0  ;;  %912 = vmatpush1.bf16.msra.mxu1 %v2823_v7  ;;  %v2838_v23 = vld [vmem:[%s3825_s3 + $0x20] ss:$8 sps:$4 sm:$0xff]   ;;  %v2813_v25 = vld [vmem:[%s3161_s25 + $0x30] sm:$0xff]   ;;  %v2814_v26 = vld [vmem:[%s3161_s25 + $0x38] sm:$0xff]   ;;  %s2207_s18 = sshll.u32 %s3719_s11, 4  ;;  %s3031_s27 = smov [#allocation5]   ;;  %s3776_s18 = int_to_ptr.vmem [resolvable:$true] %s2207_s18 }
  0x2e   : > { %913 = vmatprep.subr.bf16.mxu1 %v2828_v9  ;;  %v2812_v24 = vld [vmem:[%s3161_s25 + $0x28] sm:$0xff]   ;;  %v2815_v27 = vld [vmem:[%s3161_s25 + $0x40] sm:$0xff]   ;;  %v2843_v28 = vld [vmem:[%s3825_s3 + $0x14] ss:$8 sps:$4 sm:$0xff]   ;;  %2604 = vmatpush3.bf16.msra.mxu0 %v2847_v43  ;;  %s2961_s26 = scalar_lea.vmem %s3776_s18, 2048  ;;  %s2965_s28 = sshll.u32 %s3031_s27, 4  ;;  %s2966_s28 = int_to_ptr.vmem [resolvable:$false] %s2965_s28 }
  0x2f   : > { %v2841_v29 = vld [vmem:[%s3825_s3 + $0x10] ss:$8 sps:$4 sm:$0xff]   ;;  %v2816_v30 = vld [vmem:[%s3161_s25 + $0x48] sm:$0xff]   ;;  %v3270_v38 = vld [vmem:[%s3824_s2] sm:$0x3]  ;;  %p2962_p8 = scmp.ne.s32.totalorder %s3776_s18, %s2961_s26  ;;  %s2967_s30 = scalar_lea.vmem %s2966_s28, 4096 }
  0x30   : > { %v2846_v31 = vld [vmem:[%s3825_s3 + $0x4] ss:$8 sps:$4 sm:$0xff]   ;;  %v2844_v32 = vld [vmem:[%s3825_s3] ss:$8 sps:$4 sm:$0xff]   ;;  %v2817_v33 = vld [vmem:[%s3161_s25 + $0x50] sm:$0xff]   ;;  %v3275_v39 = vrot.slane %v3270_v38, %v415_v37  ;;  %p2968_p11 = scmp.lt.s32.totalorder %s3776_s18, %s2966_s28  ;;  %p2969_p12 = scmp.lt.s32.totalorder %s2967_s30, %s2961_s26 }
  0x31   : > { %914 = vmatpush1.bf16.msra.mxu1 %v2826_v11  ;;  %v2818_v34 = vld [vmem:[%s3161_s25 + $0x58] sm:$0xff]   ;;  %v2848_v44 = vld [vmem:[%s3827_s5 + $0x30] sm:$0xff]   ;;  %v2849_v50 = vld [vmem:[%s3827_s5 + $0x28] sm:$0xff]   ;;  %p2963_p9 = pnand %p2962_p8, %p3127_p5 }
  0x32   : > { %915 = vmatprep.subr.bf16.mxu1 %v2831_v12  ;;  %2605 = vmatprep.subr.bf16.mxu0 %v2848_v44  ;;  %v2850_v55 = vld [vmem:[%s3827_s5 + $0x20] sm:$0xff]   ;;  %p2970_p13 = por %p2969_p12, %p2968_p11 }
  0x33   : > { %2309 = vmatmul.mubr.msk.bf16.gmra.mxu0 %vm513_vm0, %v2808_v4  ;;  %p2964_p10 = pneg %p2963_p9 }
  0x34   : > { %614 = vmatprep.mubr.bf16.mxu0 %v3030_v0  ;;  %2321 = vmatmul.mubr.msk.bf16.gmra.mxu1 %vm513_vm0, %v2820_v10 }
  0x35   : > { %734 = vmatprep.mubr.bf16.mxu1 %v3030_v0  ;;  %916 = vmatpush1.bf16.msra.mxu1 %v2829_v14  ;;  %p2971_p0 = pnand %p2970_p13, %p2964_p10 }
  0x36   : > { %917 = vmatprep.subr.bf16.mxu1 %v2834_v15  ;;  %2606 = vmatpush3.bf16.msra.mxu0 %v2848_v44 }
  0x37   : > { %2607 = vmatprep.subr.bf16.mxu0 %v2849_v50 }
  0x39   : > { %918 = vmatpush1.bf16.msra.mxu1 %v2832_v17 }
  0x3a   : > { %919 = vmatprep.subr.bf16.mxu1 %v2837_v18  ;;  %2608 = vmatpush3.bf16.msra.mxu0 %v2849_v50 }
  0x3b   : > { %2310 = vmatmul.mubr.msk.bf16.gmra.mxu0 %vm513_vm0, %v2809_v6  ;;  %2609 = vmatprep.subr.bf16.mxu0 %v2850_v55 }
  0x3c   : > { %624 = vmatprep.mubr.bf16.mxu0 %v3030_v0  ;;  %2322 = vmatmul.mubr.msk.bf16.gmra.mxu1 %vm513_vm0, %v2821_v16 }
  0x3d   : > { %744 = vmatprep.mubr.bf16.mxu1 %v3030_v0  ;;  %920 = vmatpush1.bf16.msra.mxu1 %v2835_v19 }
  0x3e   : > { %921 = vmatprep.subr.bf16.mxu1 %v2840_v21  ;;  %2610 = vmatpush3.bf16.msra.mxu0 %v2850_v55 }
  0x41   : > { %922 = vmatpush1.bf16.msra.mxu1 %v2838_v23 }
  0x42   : > { %923 = vmatprep.subr.bf16.mxu1 %v2843_v28 }
  0x43   : > { %2311 = vmatmul.mubr.msk.bf16.gmra.mxu0 %vm513_vm0, %v2810_v13 }
  0x44   : > { %634 = vmatprep.mubr.bf16.mxu0 %v3030_v0  ;;  %2323 = vmatmul.mubr.msk.bf16.gmra.mxu1 %vm513_vm0, %v2822_v22 }
  0x45   : > { %943 = vmatprep.mubr.bf16.mxu1 %v3030_v0  ;;  %924 = vmatpush1.bf16.msra.mxu1 %v2841_v29 }
  0x46   : > { %925 = vmatprep.subr.bf16.mxu1 %v2846_v31 }
  0x49   : > { %926 = vmatpush1.bf16.msra.mxu1 %v2844_v32 }
  0x4b   : > { %2312 = vmatmul.mubr.msk.bf16.gmra.mxu0 %vm513_vm0, %v2811_v20 }
  0x4c   : > { %644 = vmatprep.mubr.bf16.mxu0 %v3030_v0 }
  0x53   : > { %2313 = vmatmul.mubr.msk.bf16.gmra.mxu0 %vm513_vm0, %v2812_v24 }
  0x54   : > { %654 = vmatprep.mubr.bf16.mxu0 %v3030_v0 }
  0x5b   : > { %2314 = vmatmul.mubr.msk.bf16.gmra.mxu0 %vm513_vm0, %v2813_v25 }
  0x5c   : > { %664 = vmatprep.mubr.bf16.mxu0 %v3030_v0 }
  0x63   : > { %2315 = vmatmul.mubr.msk.bf16.gmra.mxu0 %vm513_vm0, %v2814_v26 }
  0x64   : > { %674 = vmatprep.mubr.bf16.mxu0 %v3030_v0 }
  0x6b   : > { %2316 = vmatmul.mubr.msk.bf16.gmra.mxu0 %vm513_vm0, %v2815_v27 }
  0x6c   : > { %684 = vmatprep.mubr.bf16.mxu0 %v3030_v0 }
  0x73   : > { %2317 = vmatmul.mubr.msk.bf16.gmra.mxu0 %vm513_vm0, %v2816_v30 }
  0x74   : > { %694 = vmatprep.mubr.bf16.mxu0 %v3030_v0 }
  0x7b   : > { %2318 = vmatmul.mubr.msk.bf16.gmra.mxu0 %vm513_vm0, %v2817_v33 }
  0x7c   : > { %704 = vmatprep.mubr.bf16.mxu0 %v3030_v0 }
  0x83   : > { %2319 = vmatmul.mubr.msk.bf16.gmra.mxu0 %vm513_vm0, %v2818_v34 }
  0xeb   : > { %v596_v40 = vpop.f32.mrf.mxu0 }
  0xec   : > { %v597_v42 = vadd.f32 %v596_v40, %v3275_v39 }
  0xed   : > { %v3277_v41 = vpop.f32.mrf.mxu0 }
  0xee   : > { %v755_v48 = vmul.f32 %v597_v42, %v597_v42 }
  0xef   : > { %v600_v45 = vpop.f32.mrf.mxu0 }
  0xf0   : > { %v601_v46 = vadd.f32 %v600_v45, %v3275_v39 }
  0xf1   : > { %v3287_v47 = vpop.f32.mrf.mxu0 }
  0xf2   : > { %v756_v49 = vmul.f32 %v601_v46, %v601_v46 }
  0xf3   : > { %v606_v51 = vpop.f32.mrf.mxu0 }
  0xf4   : > { %v787_v52 = vpack.c.bf16 %v756_v49, %v755_v48  ;;  %v607_v54 = vadd.f32 %v606_v51, %v3275_v39 }
  0xf5   : > { %v3292_v53 = vpop.f32.mrf.mxu0 }
  0xf6   : > { %944 = vmatmul.mubr.bf16.vlgmr.msra.gmra.mxu1 %v787_v52  ;;  %v757_v59 = vmul.f32 %v607_v54, %v607_v54 }
  0xf7   : > { %v610_v56 = vpop.f32.mrf.mxu0  ;;  %953 = vmatprep.mubr.bf16.mxu1 %v3030_v0 }
  0xf8   : > { %v611_v57 = vadd.f32 %v610_v56, %v3275_v39 }
  0xf9   : > { %v3300_v58 = vpop.f32.mrf.mxu0 }
  0xfa   : > { %v758_v60 = vmul.f32 %v611_v57, %v611_v57 }
  0xfb   : > { %v616_v61 = vpop.f32.mrf.mxu0 }
  0xfc   : > { %v788_v62 = vpack.c.bf16 %v758_v60, %v757_v59  ;;  %v617_v1 = vadd.f32 %v616_v61, %v3275_v39  ;;  %v3344_v61 = vpop.f32.mrf.mxu1 }
  0xfd   : > { %v3302_v63 = vpop.f32.mrf.mxu0 }
  0xfe   : > { %954 = vmatmul.mubr.bf16.gmra.mxu1 %v788_v62  ;;  %v759_v5 = vmul.f32 %v617_v1, %v617_v1 }
  0xff   : > { %v620_v2 = vpop.f32.mrf.mxu0  ;;  %963 = vmatprep.mubr.bf16.mxu1 %v3030_v0 }
 0x100   : > { %v621_v3 = vadd.f32 %v620_v2, %v3275_v39 }
 0x101   : > { %v3307_v4 = vpop.f32.mrf.mxu0 }
 0x102   : > { %v760_v6 = vmul.f32 %v621_v3, %v621_v3 }
 0x103   : > { %v626_v7 = vpop.f32.mrf.mxu0 }
 0x104   : > { %v789_v8 = vpack.c.bf16 %v760_v6, %v759_v5  ;;  %v627_v10 = vadd.f32 %v626_v7, %v3275_v39  ;;  %v3350_v5 = vpop.f32.mrf.mxu1 }
 0x105   : > { %v3309_v9 = vpop.f32.mrf.mxu0 }
 0x106   : > { %964 = vmatmul.mubr.bf16.gmra.mxu1 %v789_v8  ;;  %v761_v14 = vmul.f32 %v627_v10, %v627_v10 }
 0x107   : > { %v630_v11 = vpop.f32.mrf.mxu0  ;;  %973 = vmatprep.mubr.bf16.mxu1 %v3030_v0 }
 0x108   : > { %v631_v12 = vadd.f32 %v630_v11, %v3275_v39 }
 0x109   : > { %v3314_v13 = vpop.f32.mrf.mxu0 }
 0x10a   : > { %v762_v15 = vmul.f32 %v631_v12, %v631_v12  ;;  %v720_v12 = vpop.f32.mrf.mxu1 }
 0x10b   : > { %v636_v16 = vpop.f32.mrf.mxu0 }
 0x10c   : > { %v790_v17 = vpack.c.bf16 %v762_v15, %v761_v14  ;;  %v637_v19 = vadd.f32 %v636_v16, %v3275_v39 }
 0x10d   : > { %v3316_v18 = vpop.f32.mrf.mxu0 }
 0x10e   : > { %974 = vmatmul.mubr.bf16.gmra.mxu1 %v790_v17  ;;  %v763_v23 = vmul.f32 %v637_v19, %v637_v19  ;;  %v3359_v19 = vpop.f32.mrf.mxu1 }
 0x10f   : > { %v640_v20 = vpop.f32.mrf.mxu0  ;;  %983 = vmatprep.mubr.bf16.mxu1 %v3030_v0 }
 0x110   : > { %v641_v21 = vadd.f32 %v640_v20, %v3275_v39  ;;  %v2851_v20 = vld [vmem:[%s3827_s5 + $0x18] sm:$0xff]  }
 0x111   : > { %v3321_v22 = vpop.f32.mrf.mxu0  ;;  %2611 = vmatprep.subr.bf16.mxu0 %v2851_v20 }
 0x112   : > { %v764_v24 = vmul.f32 %v641_v21, %v641_v21  ;;  %2612 = vmatpush3.bf16.msra.mxu0 %v2851_v20 }
 0x113   : > { %v646_v25 = vpop.f32.mrf.mxu0 }
 0x114   : > { %v791_v26 = vpack.c.bf16 %v764_v24, %v763_v23  ;;  %v647_v28 = vadd.f32 %v646_v25, %v3275_v39 }
 0x115   : > { %v3323_v27 = vpop.f32.mrf.mxu0 }
 0x116   : > { %984 = vmatmul.mubr.bf16.gmra.mxu1 %v791_v26  ;;  %v765_v32 = vmul.f32 %v647_v28, %v647_v28  ;;  %v726_v28 = vpop.f32.mrf.mxu1 }
 0x117   : > { %v650_v29 = vpop.f32.mrf.mxu0  ;;  %993 = vmatprep.mubr.bf16.mxu1 %v3030_v0 }
 0x118   : > { %v651_v30 = vadd.f32 %v650_v29, %v3275_v39  ;;  %v2852_v29 = vld [vmem:[%s3827_s5 + $0x10] sm:$0xff]  }
 0x119   : > { %v3328_v31 = vpop.f32.mrf.mxu0  ;;  %2613 = vmatprep.subr.bf16.mxu0 %v2852_v29 }
 0x11a   : > { %v766_v33 = vmul.f32 %v651_v30, %v651_v30  ;;  %2614 = vmatpush3.bf16.msra.mxu0 %v2852_v29 }
 0x11b   : > { %v656_v34 = vpop.f32.mrf.mxu0 }
 0x11c   : > { %v792_v35 = vpack.c.bf16 %v766_v33, %v765_v32  ;;  %v657_v42 = vadd.f32 %v656_v34, %v3275_v39 }
 0x11d   : > { %v3330_v40 = vpop.f32.mrf.mxu0 }
 0x11e   : > { %994 = vmatmul.mubr.bf16.gmra.mxu1 %v792_v35  ;;  %v767_v46 = vmul.f32 %v657_v42, %v657_v42  ;;  %v3374_v35 = vpop.f32.mrf.mxu1  ;;  %v2853_v42 = vld [vmem:[%s3827_s5 + $0x8] sm:$0xff]  }
 0x11f   : > { %v660_v43 = vpop.f32.mrf.mxu0  ;;  %1003 = vmatprep.mubr.bf16.mxu1 %v3030_v0  ;;  %2615 = vmatprep.subr.bf16.mxu0 %v2853_v42 }
 0x120   : > { %v661_v44 = vadd.f32 %v660_v43, %v3275_v39  ;;  %2616 = vmatpush3.bf16.msra.mxu0 %v2853_v42 }
 0x121   : > { %v3335_v45 = vpop.f32.mrf.mxu0 }
 0x122   : > { %v768_v48 = vmul.f32 %v661_v44, %v661_v44 }
 0x123   : > { %v666_v49 = vpop.f32.mrf.mxu0 }
 0x124   : > { %v793_v50 = vpack.c.bf16 %v768_v48, %v767_v46  ;;  %v667_v52 = vadd.f32 %v666_v49, %v3275_v39 }
 0x125   : > { %v3337_v51 = vpop.f32.mrf.mxu0 }
 0x126   : > { %1004 = vmatmul.mubr.bf16.gmra.mxu1 %v793_v50  ;;  %v769_v57 = vmul.f32 %v667_v52, %v667_v52  ;;  %v730_v50 = vpop.f32.mrf.mxu1  ;;  %v2854_v52 = vld [vmem:[%s3827_s5] sm:$0xff]  }
 0x127   : > { %v670_v54 = vpop.f32.mrf.mxu0  ;;  %1013 = vmatprep.mubr.bf16.mxu1 %v3030_v0  ;;  %2617 = vmatprep.subr.bf16.mxu0 %v2854_v52 }
 0x128   : > { %v671_v55 = vadd.f32 %v670_v54, %v3275_v39  ;;  %2618 = vmatpush3.bf16.msra.mxu0 %v2854_v52 }
 0x129   : > { %v3342_v56 = vpop.f32.mrf.mxu0 }
 0x12a   : > { %v770_v59 = vmul.f32 %v671_v55, %v671_v55 }
 0x12b   : > { %v676_v60 = vpop.f32.mrf.mxu0 }
 0x12c   : > { %v794_v62 = vpack.c.bf16 %v770_v59, %v769_v57  ;;  %v677_v2 = vadd.f32 %v676_v60, %v3275_v39  ;;  %v3389_v60 = vpop.f32.mrf.mxu1 }
 0x12d   : > { %v3346_v1 = vpop.f32.mrf.mxu0 }
 0x12e   : > { %1014 = vmatmul.mubr.bf16.gmra.mxu1 %v794_v62  ;;  %v771_v8 = vmul.f32 %v677_v2, %v677_v2 }
 0x12f   : > { %v680_v3 = vpop.f32.mrf.mxu0  ;;  %1023 = vmatprep.mubr.bf16.mxu1 %v3030_v0 }
 0x130   : > { %v681_v6 = vadd.f32 %v680_v3, %v3275_v39 }
 0x131   : > { %v3353_v7 = vpop.f32.mrf.mxu0 }
 0x132   : > { %v772_v10 = vmul.f32 %v681_v6, %v681_v6  ;;  %v736_v6 = vpop.f32.mrf.mxu1 }
 0x133   : > { %v686_v11 = vpop.f32.mrf.mxu0 }
 0x134   : > { %v795_v14 = vpack.c.bf16 %v772_v10, %v771_v8  ;;  %v687_v16 = vadd.f32 %v686_v11, %v3275_v39  ;;  %v717_v8 = vadd.f32 %v3344_v61, %v3275_v39  ;;  %v721_v11 = vadd.f32 %v720_v12, %v3275_v39 }
 0x135   : > { %v3355_v15 = vpop.f32.mrf.mxu0 }
 0x136   : > { %1024 = vmatmul.mubr.bf16.gmra.mxu1 %v795_v14  ;;  %v773_v24 = vmul.f32 %v687_v16, %v687_v16  ;;  %v3396_v14 = vpop.f32.mrf.mxu1  ;;  %v779_v16 = vmul.f32 %v717_v8, %v717_v8 }
 0x137   : > { %v690_v17 = vpop.f32.mrf.mxu0  ;;  %1033 = vmatprep.mubr.bf16.mxu1 %v3030_v0 }
 0x138   : > { %v691_v21 = vadd.f32 %v690_v17, %v3275_v39  ;;  %v780_v17 = vmul.f32 %v721_v11, %v721_v11  ;;  %v740_v20 = vpop.f32.mrf.mxu1 }
 0x139   : > { %v3365_v23 = vpop.f32.mrf.mxu0 }
 0x13a   : > { %v774_v25 = vmul.f32 %v691_v21, %v691_v21  ;;  %v799_v21 = vpack.c.bf16 %v780_v17, %v779_v16 }
 0x13b   : > { %v696_v26 = vpop.f32.mrf.mxu0 }
 0x13c   : > { %v796_v30 = vpack.c.bf16 %v774_v25, %v773_v24  ;;  %v697_v33 = vadd.f32 %v696_v26, %v3275_v39  ;;  %v727_v24 = vadd.f32 %v726_v28, %v3275_v39  ;;  %v731_v25 = vadd.f32 %v730_v50, %v3275_v39  ;;  %v3400_v26 = vpop.f32.mrf.mxu1 }
 0x13d   : > { %v3370_v32 = vpop.f32.mrf.mxu0 }
 0x13e   : > { %1034 = vmatmul.mubr.bf16.gmra.mxu1 %v796_v30  ;;  %v775_v46 = vmul.f32 %v697_v33, %v697_v33  ;;  %v781_v61 = vmul.f32 %v727_v24, %v727_v24  ;;  %v782_v12 = vmul.f32 %v731_v25, %v731_v25  ;;  %v746_v29 = vpop.f32.mrf.mxu1  ;;  %v737_v33 = vadd.f32 %v736_v6, %v3275_v39 }
 0x13f   : > { %v700_v34 = vpop.f32.mrf.mxu0  ;;  %1043 = vmatprep.mubr.bf16.mxu1 %v3030_v0 }
 0x140   : > { %v701_v43 = vadd.f32 %v700_v34, %v3275_v39  ;;  %v800_v30 = vpack.c.bf16 %v782_v12, %v781_v61  ;;  %v741_v34 = vadd.f32 %v740_v20, %v3275_v39  ;;  %v3405_v42 = vpop.f32.mrf.mxu1  ;;  %v783_v28 = vmul.f32 %v737_v33, %v737_v33  ;;  %v2857_v12 = vld [vmem:[%s3829_s7 + $0x28] sm:$0xff]  }
 0x141   : > { %v3380_v44 = vpop.f32.mrf.mxu0 }
 0x142   : > { %v776_v48 = vmul.f32 %v701_v43, %v701_v43  ;;  %v784_v43 = vmul.f32 %v741_v34, %v741_v34 }
 0x143   : > { %v706_v49 = vpop.f32.mrf.mxu0 }
 0x144   : > { %v797_v54 = vpack.c.bf16 %v776_v48, %v775_v46  ;;  %v707_v57 = vadd.f32 %v706_v49, %v3275_v39  ;;  %v750_v46 = vpop.f32.mrf.mxu1  ;;  %v801_v48 = vpack.c.bf16 %v784_v43, %v783_v28  ;;  %v747_v49 = vadd.f32 %v746_v29, %v3275_v39 }
 0x145   : > { %v3385_v55 = vpop.f32.mrf.mxu0  ;;  %v751_v50 = vadd.f32 %v750_v46, %v3275_v39  ;;  %v2858_v46 = vld [vmem:[%s3829_s7 + $0x20] sm:$0xff]  }
 0x146   : > { %1044 = vmatmul.mubr.bf16.gmra.mxu1 %v797_v54  ;;  %v777_v2 = vmul.f32 %v707_v57, %v707_v57  ;;  %v785_v52 = vmul.f32 %v747_v49, %v747_v49 }
 0x147   : > { %v710_v59 = vpop.f32.mrf.mxu0  ;;  %1053 = vmatprep.mubr.bf16.mxu1 %v3030_v0  ;;  %v786_v54 = vmul.f32 %v751_v50, %v751_v50 }
 0x148   : > { %v711_v62 = vadd.f32 %v710_v59, %v3275_v39  ;;  %v419_v59 = vsub.s32 1, %v3264_v36  ;;  %v2856_v36 = vld [vmem:[%s3829_s7 + $0x30] sm:$0xff]  }
 0x149   : > { %v802_v57 = vpack.c.bf16 %v786_v54, %v785_v52 }
 0x14a   : > { %v778_v3 = vmul.f32 %v711_v62, %v711_v62  ;;  %v819_v62 = vld [vmem:[%s3826_s4] sm:$0x3] }
 0x14b   : > { %v3422_v39 = vrot.slane %v819_v62, %v415_v37 }
 0x14c   : > { %v798_v10 = vpack.c.bf16 %v778_v3, %v777_v2  ;;  %v3415_v2 = vpop.f32.mrf.mxu1  ;;  %v3418_v3 = vrot.slane %v3270_v38, %v419_v59  ;;  %v2855_v38 = vld [vmem:[%s3829_s7 + $0x38] sm:$0xff]  }
 0x14d   : > { %2651 = vmatprep.subr.bf16.mxu1 %v2855_v38 }
 0x14e   : > { %1054 = vmatmul.mubr.bf16.gmra.mxu1 %v798_v10  ;;  %v599_v10 = vadd.f32 %v3277_v41, %v3418_v3  ;;  %v603_v41 = vadd.f32 %v3287_v47, %v3418_v3  ;;  %v609_v28 = vadd.f32 %v3292_v53, %v3418_v3  ;;  %v613_v53 = vadd.f32 %v3300_v58, %v3418_v3 }
 0x14f   : > { %1063 = vmatprep.mubr.bf16.mxu1 %v3030_v0  ;;  %2652 = vmatpush3.bf16.msra.mxu1 %v2855_v38 }
 0x150   : > { %2653 = vmatprep.subr.bf16.mxu1 %v2856_v36 }
 0x153   : > { %2654 = vmatpush3.bf16.msra.mxu1 %v2856_v36 }
 0x154   : > { %2655 = vmatprep.subr.bf16.mxu1 %v2857_v12 }
 0x156   : > { %1064 = vmatmul.mubr.bf16.gmra.mxu1 %v799_v21 }
 0x157   : > { %1073 = vmatprep.mubr.bf16.mxu1 %v3030_v0  ;;  %2656 = vmatpush3.bf16.msra.mxu1 %v2857_v12 }
 0x158   : > { %2657 = vmatprep.subr.bf16.mxu1 %v2858_v46 }
 0x15b   : > { %2658 = vmatpush3.bf16.msra.mxu1 %v2858_v46 }
 0x15e   : > { %1074 = vmatmul.mubr.bf16.gmra.mxu1 %v800_v30 }
 0x15f   : > { %1083 = vmatprep.mubr.bf16.mxu1 %v3030_v0 }
 0x166   : > { %1084 = vmatmul.mubr.bf16.gmra.mxu1 %v801_v48 }
 0x167   : > { %1093 = vmatprep.mubr.bf16.mxu1 %v3030_v0  ;;  %v3424_v0 = vrot.slane %v819_v62, %v419_v59  ;;  %v2859_v62 = vld [vmem:[%s3829_s7 + $0x18] sm:$0xff]  }
 0x168   : > { %2659 = vmatprep.subr.bf16.mxu1 %v2859_v62 }
 0x169   : > { %2660 = vmatpush3.bf16.msra.mxu1 %v2859_v62 }
 0x16e   : > { %1094 = vmatmul.mubr.bf16.gmra.mxu1 %v802_v57 }
 0x1b6   : > { %v945_v6 = vpop.f32.mrf.mxu1 }
 0x1b7   : > { %v946_v11 = vadd.f32 %v945_v6, %v3422_v39 }
 0x1b8   : > { %v947_v8 = vpop.f32.mrf.mxu1 }
 0x1b9   : > { %v948_v16 = vadd.f32 %v947_v8, %v3424_v0  ;;  %v1104_v24 = vmul.f32 %v946_v11, %v946_v11 }
 0x1ba   : > { %v949_v37 = vpop.f32.mrf.mxu1 }
 0x1bb   : > { %v950_v17 = vadd.f32 %v949_v37, %v3422_v39  ;;  %v3437_v20 = vadd.f32 %v948_v16, %v599_v10  ;;  %v619_v16 = vadd.f32 %v3302_v63, %v3418_v3 }
 0x1bc   : > { %v951_v21 = vpop.f32.mrf.mxu1 }
 0x1bd   : > { %v1105_v25 = vmul.f32 %v950_v17, %v950_v17  ;;  %v952_v61 = vadd.f32 %v951_v21, %v3424_v0 }
 0x1be   : > { %v955_v29 = vpop.f32.mrf.mxu1 }
 0x1bf   : > { %v1168_v30 = vpack.c.bf16 %v1105_v25, %v1104_v24  ;;  %v3445_v33 = vadd.f32 %v952_v61, %v603_v41  ;;  %v956_v47 = vadd.f32 %v955_v29, %v3422_v39  ;;  %v623_v41 = vadd.f32 %v3307_v4, %v3418_v3 }
 0x1c0   : > { %v957_v34 = vpop.f32.mrf.mxu1 }
 0x1c1   : > { %v958_v43 = vadd.f32 %v957_v34, %v3424_v0  ;;  %2619 = vmatprep.mubr.bf16.mxu0 %v1168_v30  ;;  %v1106_v54 = vmul.f32 %v956_v47, %v956_v47  ;;  %v629_v34 = vadd.f32 %v3309_v9, %v3418_v3 }
 0x1c2   : > { %v959_v48 = vpop.f32.mrf.mxu1 }
 0x1c3   : > { %v960_v49 = vadd.f32 %v959_v48, %v3422_v39  ;;  %v3455_v50 = vadd.f32 %v958_v43, %v609_v28 }
 0x1c4   : > { %v961_v52 = vpop.f32.mrf.mxu1 }
 0x1c5   : > { %v1107_v57 = vmul.f32 %v960_v49, %v960_v49  ;;  %v962_v59 = vadd.f32 %v961_v52, %v3424_v0  ;;  %v633_v49 = vadd.f32 %v3314_v13, %v3418_v3 }
 0x1c6   : > { %v965_v6 = vpop.f32.mrf.mxu1 }
 0x1c7   : > { %v1169_v8 = vpack.c.bf16 %v1107_v57, %v1106_v54  ;;  %v3463_v10 = vadd.f32 %v962_v59, %v613_v53  ;;  %v966_v58 = vadd.f32 %v965_v6, %v3422_v39  ;;  %v639_v6 = vadd.f32 %v3316_v18, %v3418_v3 }
 0x1c8   : > { %v967_v11 = vpop.f32.mrf.mxu1 }
 0x1c9   : > { %v968_v38 = vadd.f32 %v967_v11, %v3424_v0  ;;  %2620 = vmatmul.mubr.bf16.vlgmr.msra.gmra.mxu0 %v1169_v8  ;;  %v1108_v24 = vmul.f32 %v966_v58, %v966_v58 }
 0x1ca   : > { %v969_v36 = vpop.f32.mrf.mxu1 }
 0x1cb   : > { %v970_v37 = vadd.f32 %v969_v36, %v3422_v39  ;;  %v3470_v17 = vadd.f32 %v968_v38, %v619_v16  ;;  %v643_v36 = vadd.f32 %v3321_v22, %v3418_v3 }
 0x1cc   : > { %v971_v21 = vpop.f32.mrf.mxu1 }
 0x1cd   : > { %v1109_v25 = vmul.f32 %v970_v37, %v970_v37  ;;  %v972_v63 = vadd.f32 %v971_v21, %v3424_v0 }
 0x1ce   : > { %v975_v61 = vpop.f32.mrf.mxu1 }
 0x1cf   : > { %v1170_v12 = vpack.c.bf16 %v1109_v25, %v1108_v24  ;;  %v3475_v29 = vadd.f32 %v972_v63, %v623_v41  ;;  %v976_v28 = vadd.f32 %v975_v61, %v3422_v39  ;;  %v649_v61 = vadd.f32 %v3323_v27, %v3418_v3 }
 0x1d0   : > { %v977_v30 = vpop.f32.mrf.mxu1 }
 0x1d1   : > { %v978_v47 = vadd.f32 %v977_v30, %v3424_v0  ;;  %2623 = vmatprep.mubr.bf16.mxu0 %v1170_v12  ;;  %v1110_v52 = vmul.f32 %v976_v28, %v976_v28 }
 0x1d2   : > { %v979_v43 = vpop.f32.mrf.mxu1 }
 0x1d3   : > { %v980_v4 = vadd.f32 %v979_v43, %v3422_v39  ;;  %v3482_v46 = vadd.f32 %v978_v47, %v629_v34  ;;  %v653_v43 = vadd.f32 %v3328_v31, %v3418_v3 }
 0x1d4   : > { %v981_v48 = vpop.f32.mrf.mxu1 }
 0x1d5   : > { %v1111_v53 = vmul.f32 %v980_v4, %v980_v4  ;;  %v982_v54 = vadd.f32 %v981_v48, %v3424_v0 }
 0x1d6   : > { %v985_v57 = vpop.f32.mrf.mxu1 }
 0x1d7   : > { %v1171_v9 = vpack.c.bf16 %v1111_v53, %v1110_v52  ;;  %v3487_v59 = vadd.f32 %v982_v54, %v633_v49  ;;  %v986_v8 = vadd.f32 %v985_v57, %v3422_v39  ;;  %v659_v57 = vadd.f32 %v3330_v40, %v3418_v3 }
 0x1d8   : > { %v987_v62 = vpop.f32.mrf.mxu1 }
 0x1d9   : > { %v988_v11 = vadd.f32 %v987_v62, %v3424_v0  ;;  %2624 = vmatmul.mubr.bf16.gmra.mxu0 %v1171_v9  ;;  %v1112_v37 = vmul.f32 %v986_v8, %v986_v8 }
 0x1da   : > { %v989_v16 = vpop.f32.mrf.mxu1 }
 0x1db   : > { %v990_v13 = vadd.f32 %v989_v16, %v3422_v39  ;;  %v3494_v58 = vadd.f32 %v988_v11, %v639_v6  ;;  %v663_v16 = vadd.f32 %v3335_v45, %v3418_v3 }
 0x1dc   : > { %v991_v38 = vpop.f32.mrf.mxu1 }
 0x1dd   : > { %v1113_v21 = vmul.f32 %v990_v13, %v990_v13  ;;  %v992_v41 = vadd.f32 %v991_v38, %v3424_v0 }
 0x1de   : > { %v995_v24 = vpop.f32.mrf.mxu1 }
 0x1df   : > { %v1172_v18 = vpack.c.bf16 %v1113_v21, %v1112_v37  ;;  %v3499_v25 = vadd.f32 %v992_v41, %v643_v36  ;;  %v996_v12 = vadd.f32 %v995_v24, %v3422_v39  ;;  %v669_v24 = vadd.f32 %v3337_v51, %v3418_v3 }
 0x1e0   : > { %v997_v63 = vpop.f32.mrf.mxu1 }
 0x1e1   : > { %v998_v30 = vadd.f32 %v997_v63, %v3424_v0  ;;  %2627 = vmatprep.mubr.bf16.mxu0 %v1172_v18  ;;  %v1114_v4 = vmul.f32 %v996_v12, %v996_v12 }
 0x1e2   : > { %v999_v34 = vpop.f32.mrf.mxu1 }
 0x1e3   : > { %v1000_v22 = vadd.f32 %v999_v34, %v3422_v39  ;;  %v3506_v28 = vadd.f32 %v998_v30, %v649_v61  ;;  %v673_v34 = vadd.f32 %v3342_v56, %v3418_v3 }
 0x1e4   : > { %v1001_v47 = vpop.f32.mrf.mxu1 }
 0x1e5   : > { %v1115_v48 = vmul.f32 %v1000_v22, %v1000_v22  ;;  %v1002_v49 = vadd.f32 %v1001_v47, %v3424_v0 }
 0x1e6   : > { %v1005_v52 = vpop.f32.mrf.mxu1 }
 0x1e7   : > { %v1173_v27 = vpack.c.bf16 %v1115_v48, %v1114_v4  ;;  %v3511_v53 = vadd.f32 %v1002_v49, %v653_v43  ;;  %v1006_v9 = vadd.f32 %v1005_v52, %v3422_v39  ;;  %v679_v52 = vadd.f32 %v3346_v1, %v3418_v3 }
 0x1e8   : > { %v1007_v54 = vpop.f32.mrf.mxu1 }
 0x1e9   : > { %v1008_v62 = vadd.f32 %v1007_v54, %v3424_v0  ;;  %2628 = vmatmul.mubr.bf16.gmra.mxu0 %v1173_v27  ;;  %v1116_v13 = vmul.f32 %v1006_v9, %v1006_v9 }
 0x1ea   : > { %v1009_v6 = vpop.f32.mrf.mxu1 }
 0x1eb   : > { %v1010_v31 = vadd.f32 %v1009_v6, %v3422_v39  ;;  %v3518_v8 = vadd.f32 %v1008_v62, %v659_v57  ;;  %v683_v6 = vadd.f32 %v3353_v7, %v3418_v3 }
 0x1ec   : > { %v1011_v11 = vpop.f32.mrf.mxu1 }
 0x1ed   : > { %v1117_v38 = vmul.f32 %v1010_v31, %v1010_v31  ;;  %v1012_v36 = vadd.f32 %v1011_v11, %v3424_v0 }
 0x1ee   : > { %v1015_v37 = vpop.f32.mrf.mxu1 }
 0x1ef   : > { %v1174_v40 = vpack.c.bf16 %v1117_v38, %v1116_v13  ;;  %v3523_v21 = vadd.f32 %v1012_v36, %v663_v16  ;;  %v1016_v18 = vadd.f32 %v1015_v37, %v3422_v39  ;;  %v689_v37 = vadd.f32 %v3355_v15, %v3418_v3 }
 0x1f0   : > { %v1017_v41 = vpop.f32.mrf.mxu1 }
 0x1f1   : > { %v1018_v63 = vadd.f32 %v1017_v41, %v3424_v0  ;;  %2631 = vmatprep.mubr.bf16.mxu0 %v1174_v40  ;;  %v1118_v22 = vmul.f32 %v1016_v18, %v1016_v18 }
 0x1f2   : > { %v1019_v61 = vpop.f32.mrf.mxu1 }
 0x1f3   : > { %v1020_v45 = vadd.f32 %v1019_v61, %v3422_v39  ;;  %v3530_v12 = vadd.f32 %v1018_v63, %v669_v24  ;;  %v693_v61 = vadd.f32 %v3365_v23, %v3418_v3  ;;  %v2860_v23 = vld [vmem:[%s3829_s7 + $0x10] sm:$0xff]  }
 0x1f4   : > { %v1021_v30 = vpop.f32.mrf.mxu1  ;;  %2661 = vmatprep.subr.bf16.mxu1 %v2860_v23 }
 0x1f5   : > { %v1119_v47 = vmul.f32 %v1020_v45, %v1020_v45  ;;  %v1022_v43 = vadd.f32 %v1021_v30, %v3424_v0  ;;  %2662 = vmatpush3.bf16.msra.mxu1 %v2860_v23 }
 0x1f6   : > { %v1025_v4 = vpop.f32.mrf.mxu1 }
 0x1f7   : > { %v1175_v51 = vpack.c.bf16 %v1119_v47, %v1118_v22  ;;  %v3535_v48 = vadd.f32 %v1022_v43, %v673_v34  ;;  %v1026_v27 = vadd.f32 %v1025_v4, %v3422_v39  ;;  %v699_v4 = vadd.f32 %v3370_v32, %v3418_v3 }
 0x1f8   : > { %v1027_v49 = vpop.f32.mrf.mxu1  ;;  %v703_v32 = vadd.f32 %v3380_v44, %v3418_v3 }
 0x1f9   : > { %v1028_v54 = vadd.f32 %v1027_v49, %v3424_v0  ;;  %2632 = vmatmul.mubr.bf16.gmra.mxu0 %v1175_v51  ;;  %v1120_v31 = vmul.f32 %v1026_v27, %v1026_v27 }
 0x1fa   : > { %v1029_v57 = vpop.f32.mrf.mxu1 }
 0x1fb   : > { %v1030_v56 = vadd.f32 %v1029_v57, %v3422_v39  ;;  %v3542_v9 = vadd.f32 %v1028_v54, %v679_v52 }
 0x1fc   : > { %v1031_v62 = vpop.f32.mrf.mxu1 }
 0x1fd   : > { %v1121_v11 = vmul.f32 %v1030_v56, %v1030_v56  ;;  %v1032_v16 = vadd.f32 %v1031_v62, %v3424_v0 }
 0x1fe   : > { %v1035_v13 = vpop.f32.mrf.mxu1 }
 0x1ff   : > { %v1176_v1 = vpack.c.bf16 %v1121_v11, %v1120_v31  ;;  %v3547_v38 = vadd.f32 %v1032_v16, %v683_v6  ;;  %v1036_v40 = vadd.f32 %v1035_v13, %v3422_v39  ;;  %v2861_v31 = vld [vmem:[%s3829_s7 + $0x8] sm:$0xff]  }
 0x200   : > { %v1037_v36 = vpop.f32.mrf.mxu1  ;;  %2663 = vmatprep.subr.bf16.mxu1 %v2861_v31 }
 0x201   : > { %v1038_v41 = vadd.f32 %v1037_v36, %v3424_v0  ;;  %2635 = vmatprep.mubr.bf16.mxu0 %v1176_v1  ;;  %v1122_v45 = vmul.f32 %v1036_v40, %v1036_v40  ;;  %2664 = vmatpush3.bf16.msra.mxu1 %v2861_v31  ;;  %v709_v36 = vadd.f32 %v3385_v55, %v3418_v3  ;;  %v2862_v40 = vld [vmem:[%s3829_s7] sm:$0xff]  }
 0x202   : > { %v1039_v24 = vpop.f32.mrf.mxu1  ;;  %2665 = vmatprep.subr.bf16.mxu1 %v2862_v40  ;;  %v729_v31 = vadd.f32 %v3374_v35, %v3418_v3 }
 0x203   : > { %v1040_v7 = vadd.f32 %v1039_v24, %v3422_v39  ;;  %v3554_v18 = vadd.f32 %v1038_v41, %v689_v37 }
 0x204   : > { %v1041_v63 = vpop.f32.mrf.mxu1 }
 0x205   : > { %v1123_v30 = vmul.f32 %v1040_v7, %v1040_v7  ;;  %v1042_v34 = vadd.f32 %v1041_v63, %v3424_v0  ;;  %2666 = vmatpush3.bf16.msra.mxu1 %v2862_v40 }
 0x206   : > { %v1045_v22 = vpop.f32.mrf.mxu1 }
 0x207   : > { %v1177_v15 = vpack.c.bf16 %v1123_v30, %v1122_v45  ;;  %v3559_v47 = vadd.f32 %v1042_v34, %v693_v61  ;;  %v1046_v51 = vadd.f32 %v1045_v22, %v3422_v39  ;;  %v719_v22 = vadd.f32 %v3350_v5, %v3418_v3 }
 0x208   : > { %v1047_v43 = vpop.f32.mrf.mxu1 }
 0x209   : > { %v1048_v49 = vadd.f32 %v1047_v43, %v3424_v0  ;;  %2636 = vmatmul.mubr.bf16.gmra.mxu0 %v1177_v15  ;;  %v1124_v56 = vmul.f32 %v1046_v51, %v1046_v51 }
 0x20a   : > { %v1049_v52 = vpop.f32.mrf.mxu1 }
 0x20b   : > { %v1050_v27 = vadd.f32 %v1049_v52, %v3422_v39  ;;  %v3569_v54 = vadd.f32 %v1048_v49, %v699_v4  ;;  %v723_v52 = vadd.f32 %v3359_v19, %v3418_v3 }
 0x20c   : > { %v1051_v57 = vpop.f32.mrf.mxu1 }
 0x20d   : > { %v1125_v62 = vmul.f32 %v1050_v27, %v1050_v27  ;;  %v1052_v6 = vadd.f32 %v1051_v57, %v3424_v0 }
 0x20e   : > { %v1055_v11 = vpop.f32.mrf.mxu1 }
 0x20f   : > { %v1178_v16 = vpack.c.bf16 %v1125_v62, %v1124_v56  ;;  %v3577_v13 = vadd.f32 %v1052_v6, %v703_v32  ;;  %v1056_v44 = vadd.f32 %v1055_v11, %v3422_v39 }
 0x210   : > { %v1057_v1 = vpop.f32.mrf.mxu1 }
 0x211   : > { %v1058_v37 = vadd.f32 %v1057_v1, %v3424_v0  ;;  %2639 = vmatprep.mubr.bf16.mxu0 %v1178_v16  ;;  %v1126_v61 = vmul.f32 %v1056_v44, %v1056_v44 }
 0x212   : > { %v1059_v41 = vpop.f32.mrf.mxu1 }
 0x213   : > { %v1060_v24 = vadd.f32 %v1059_v41, %v3422_v39  ;;  %v3587_v7 = vadd.f32 %v1058_v37, %v709_v36  ;;  %v733_v37 = vadd.f32 %v3389_v60, %v3418_v3 }
 0x214   : > { %v3589_v63 = vpop.f32.mrf.mxu1 }
 0x215   : > { %v1127_v55 = vmul.f32 %v1060_v24, %v1060_v24 }
 0x216   : > { %v1065_v45 = vpop.f32.mrf.mxu1 }
 0x217   : > { %v1179_v30 = vpack.c.bf16 %v1127_v55, %v1126_v61  ;;  %v1066_v15 = vadd.f32 %v1065_v45, %v3422_v39 }
 0x218   : > { %v1067_v34 = vpop.f32.mrf.mxu1 }
 0x219   : > { %v1068_v43 = vadd.f32 %v1067_v34, %v3424_v0  ;;  %2640 = vmatmul.mubr.bf16.gmra.mxu0 %v1179_v30  ;;  %v1128_v27 = vmul.f32 %v1066_v15, %v1066_v15  ;;  %v739_v30 = vadd.f32 %v3396_v14, %v3418_v3 }
 0x21a   : > { %v1069_v4 = vpop.f32.mrf.mxu1 }
 0x21b   : > { %v1070_v51 = vadd.f32 %v1069_v4, %v3422_v39  ;;  %v3596_v49 = vadd.f32 %v1068_v43, %v719_v22 }
 0x21c   : > { %v1071_v23 = vpop.f32.mrf.mxu1 }
 0x21d   : > { %v1129_v57 = vmul.f32 %v1070_v51, %v1070_v51  ;;  %v1072_v32 = vadd.f32 %v1071_v23, %v3424_v0  ;;  %v743_v51 = vadd.f32 %v3400_v26, %v3418_v3 }
 0x21e   : > { %v1075_v56 = vpop.f32.mrf.mxu1 }
 0x21f   : > { %v1180_v5 = vpack.c.bf16 %v1129_v57, %v1128_v27  ;;  %v3601_v62 = vadd.f32 %v1072_v32, %v723_v52  ;;  %v1076_v11 = vadd.f32 %v1075_v56, %v3422_v39 }
 0x220   : > { %v1077_v6 = vpop.f32.mrf.mxu1 }
 0x221   : > { %v1078_v16 = vadd.f32 %v1077_v6, %v3424_v0  ;;  %2643 = vmatprep.mubr.bf16.mxu0 %v1180_v5  ;;  %v1130_v40 = vmul.f32 %v1076_v11, %v1076_v11  ;;  %v749_v5 = vadd.f32 %v3405_v42, %v3418_v3 }
 0x222   : > { %v1079_v1 = vpop.f32.mrf.mxu1 }
 0x223   : > { %v1080_v19 = vadd.f32 %v1079_v1, %v3422_v39  ;;  %v3608_v36 = vadd.f32 %v1078_v16, %v729_v31 }
 0x224   : > { %v1081_v44 = vpop.f32.mrf.mxu1 }
 0x225   : > { %v1131_v41 = vmul.f32 %v1080_v19, %v1080_v19  ;;  %v1082_v24 = vadd.f32 %v1081_v44, %v3424_v0 }
 0x226   : > { %v1085_v61 = vpop.f32.mrf.mxu1 }
 0x227   : > { %v1181_v35 = vpack.c.bf16 %v1131_v41, %v1130_v40  ;;  %v3613_v55 = vadd.f32 %v1082_v24, %v733_v37  ;;  %v1086_v34 = vadd.f32 %v1085_v61, %v3422_v39  ;;  %v3634_v37 = vpop.f32.mrf.mxu0  ;;  %v2863_v40 = vld [vmem:[#allocation2 + $0x38] sm:$0xff]   ;;  %v3639_v24 = vld [vmem:[%s3828_s6] ss:$0 sm:$0xff] }
 0x228   : > { %v1087_v45 = vpop.f32.mrf.mxu1  ;;  %2699 = vmatprep.subr.bf16.mxu0 %v2863_v40 }
 0x229   : > { %v1088_v22 = vadd.f32 %v1087_v45, %v3424_v0  ;;  %2644 = vmatmul.mubr.bf16.gmra.mxu0 %v1181_v35  ;;  %v1132_v23 = vmul.f32 %v1086_v34, %v1086_v34 }
 0x22a   : > { %v1089_v15 = vpop.f32.mrf.mxu1  ;;  %2700 = vmatpush3.bf16.msra.mxu0 %v2863_v40 }
 0x22b   : > { %v1090_v60 = vadd.f32 %v1089_v15, %v3422_v39  ;;  %v3620_v43 = vadd.f32 %v1088_v22, %v739_v30 }
 0x22c   : > { %v1091_v4 = vpop.f32.mrf.mxu1 }
 0x22d   : > { %v1133_v52 = vmul.f32 %v1090_v60, %v1090_v60  ;;  %v1092_v27 = vadd.f32 %v1091_v4, %v3424_v0 }
 0x22e   : > { %v1095_v57 = vpop.f32.mrf.mxu1 }
 0x22f   : > { %v1182_v14 = vpack.c.bf16 %v1133_v52, %v1132_v23  ;;  %v3625_v32 = vadd.f32 %v1092_v27, %v743_v51  ;;  %v1096_v6 = vadd.f32 %v1095_v57, %v3422_v39 }
 0x230   : > { %v1097_v56 = vpop.f32.mrf.mxu1 }
 0x231   : > { %v1098_v31 = vadd.f32 %v1097_v56, %v3424_v0  ;;  %2647 = vmatprep.mubr.bf16.mxu0 %v1182_v14  ;;  %v1134_v1 = vmul.f32 %v1096_v6, %v1096_v6 }
 0x232   : > { %v1099_v11 = vpop.f32.mrf.mxu1 }
 0x233   : > { %v1100_v26 = vadd.f32 %v1099_v11, %v3422_v39  ;;  %v3632_v16 = vadd.f32 %v1098_v31, %v749_v5 }
 0x235   : > { %v1135_v19 = vmul.f32 %v1100_v26, %v1100_v26 }
 0x237   : > { %v1183_v44 = vpack.c.bf16 %v1135_v19, %v1134_v1 }
 0x239   : > { %2648 = vmatmul.mubr.bf16.gmra.mxu0 %v1183_v44 }
 0x289   : > { %v2621_v41 = vpop.f32.mrf.mxu0 }
 0x28a   : > { %v1298_v45 = vadd.f32 %v2621_v41, %v3639_v24 }
 0x28b   : > { %v1289_v42 = vpop.f32.mrf.mxu0 }
 0x28c   : > { %v1290_v39 = vadd.f32 %v3639_v24, %v1289_v42  ;;  %v1418_v4 = vmul.f32 %v1298_v45, %v1298_v45 }
 0x28d   : > { %v2622_v61 = vpop.f32.mrf.mxu0 }
 0x28e   : > { %v1301_v35 = vadd.f32 %v2622_v61, %v3639_v24  ;;  %v1416_v15 = vmul.f32 %v1290_v39, %v1290_v39 }
 0x28f   : > { %v1292_v30 = vpop.f32.mrf.mxu0 }
 0x290   : > { %v1293_v34 = vadd.f32 %v3639_v24, %v1292_v30  ;;  %v1419_v22 = vmul.f32 %v1301_v35, %v1301_v35 }
 0x292   : > { %v1417_v60 = vmul.f32 %v1293_v34, %v1293_v34  ;;  %v1449_v23 = vpack.c.bf16 %v1419_v22, %v1418_v4 }
 0x294   : > { %v1448_v51 = vpack.c.bf16 %v1417_v60, %v1416_v15 }
 0x296   : > { %2667 = vmatprep.mubr.bf16.mxu1 %v1448_v51 }
 0x297   : > { %2668 = vmatmul.mubr.bf16.vlgmr.msra.gmra.mxu1 %v1449_v23 }
 0x299   : > { %v2625_v52 = vpop.f32.mrf.mxu0 }
 0x29a   : > { %v1314_v5 = vadd.f32 %v2625_v52, %v3639_v24 }
 0x29b   : > { %v1305_v27 = vpop.f32.mrf.mxu0 }
 0x29c   : > { %v1306_v14 = vadd.f32 %v3639_v24, %v1305_v27  ;;  %v1422_v19 = vmul.f32 %v1314_v5, %v1314_v5 }
 0x29d   : > { %v2626_v57 = vpop.f32.mrf.mxu0 }
 0x29e   : > { %v1317_v56 = vadd.f32 %v2626_v57, %v3639_v24  ;;  %v1420_v26 = vmul.f32 %v1306_v14, %v1306_v14 }
 0x29f   : > { %v1308_v6 = vpop.f32.mrf.mxu0 }
 0x2a0   : > { %v1309_v31 = vadd.f32 %v3639_v24, %v1308_v6  ;;  %v1423_v11 = vmul.f32 %v1317_v56, %v1317_v56 }
 0x2a2   : > { %v1421_v1 = vmul.f32 %v1309_v31, %v1309_v31  ;;  %v1451_v40 = vpack.c.bf16 %v1423_v11, %v1422_v19 }
 0x2a4   : > { %v1450_v44 = vpack.c.bf16 %v1421_v1, %v1420_v26 }
 0x2a6   : > { %2671 = vmatprep.mubr.bf16.mxu1 %v1450_v44 }
 0x2a7   : > { %2672 = vmatmul.mubr.bf16.gmra.mxu1 %v1451_v40 }
 0x2a9   : > { %v2629_v41 = vpop.f32.mrf.mxu0 }
 0x2aa   : > { %v1330_v45 = vadd.f32 %v2629_v41, %v3639_v24 }
 0x2ab   : > { %v1321_v42 = vpop.f32.mrf.mxu0 }
 0x2ac   : > { %v1322_v39 = vadd.f32 %v3639_v24, %v1321_v42  ;;  %v1426_v4 = vmul.f32 %v1330_v45, %v1330_v45 }
 0x2ad   : > { %v2630_v61 = vpop.f32.mrf.mxu0 }
 0x2ae   : > { %v1333_v35 = vadd.f32 %v2630_v61, %v3639_v24  ;;  %v1424_v15 = vmul.f32 %v1322_v39, %v1322_v39 }
 0x2af   : > { %v1324_v30 = vpop.f32.mrf.mxu0 }
 0x2b0   : > { %v1325_v34 = vadd.f32 %v3639_v24, %v1324_v30  ;;  %v1427_v22 = vmul.f32 %v1333_v35, %v1333_v35 }
 0x2b2   : > { %v1425_v60 = vmul.f32 %v1325_v34, %v1325_v34  ;;  %v1453_v23 = vpack.c.bf16 %v1427_v22, %v1426_v4 }
 0x2b4   : > { %v1452_v51 = vpack.c.bf16 %v1425_v60, %v1424_v15 }
 0x2b6   : > { %2675 = vmatprep.mubr.bf16.mxu1 %v1452_v51 }
 0x2b7   : > { %2676 = vmatmul.mubr.bf16.gmra.mxu1 %v1453_v23 }
 0x2b9   : > { %v2633_v52 = vpop.f32.mrf.mxu0 }
 0x2ba   : > { %v1346_v5 = vadd.f32 %v2633_v52, %v3639_v24  ;;  %v2864_v52 = vld [vmem:[#allocation2 + $0x30] sm:$0xff]  }
 0x2bb   : > { %v1337_v27 = vpop.f32.mrf.mxu0  ;;  %2701 = vmatprep.subr.bf16.mxu0 %v2864_v52 }
 0x2bc   : > { %v1338_v14 = vadd.f32 %v3639_v24, %v1337_v27  ;;  %v1430_v19 = vmul.f32 %v1346_v5, %v1346_v5  ;;  %2702 = vmatpush3.bf16.msra.mxu0 %v2864_v52  ;;  %v2866_v5 = vld [vmem:[#allocation2 + $0x20] sm:$0xff]  }
 0x2bd   : > { %v2634_v57 = vpop.f32.mrf.mxu0 }
 0x2be   : > { %v1349_v56 = vadd.f32 %v2634_v57, %v3639_v24  ;;  %v1428_v26 = vmul.f32 %v1338_v14, %v1338_v14  ;;  %v2865_v57 = vld [vmem:[#allocation2 + $0x28] sm:$0xff]  }
 0x2bf   : > { %v1340_v6 = vpop.f32.mrf.mxu0  ;;  %2703 = vmatprep.subr.bf16.mxu0 %v2865_v57 }
 0x2c0   : > { %v1341_v31 = vadd.f32 %v3639_v24, %v1340_v6  ;;  %v1431_v11 = vmul.f32 %v1349_v56, %v1349_v56  ;;  %2704 = vmatpush3.bf16.msra.mxu0 %v2865_v57 }
 0x2c1   : > { %2705 = vmatprep.subr.bf16.mxu0 %v2866_v5 }
 0x2c2   : > { %v1429_v1 = vmul.f32 %v1341_v31, %v1341_v31  ;;  %v1455_v40 = vpack.c.bf16 %v1431_v11, %v1430_v19 }
 0x2c4   : > { %v1454_v44 = vpack.c.bf16 %v1429_v1, %v1428_v26  ;;  %2706 = vmatpush3.bf16.msra.mxu0 %v2866_v5 }
 0x2c6   : > { %2679 = vmatprep.mubr.bf16.mxu1 %v1454_v44  ;;  %v2867_v44 = vld [vmem:[#allocation2 + $0x18] sm:$0xff]  }
 0x2c7   : > { %2680 = vmatmul.mubr.bf16.gmra.mxu1 %v1455_v40  ;;  %2707 = vmatprep.subr.bf16.mxu0 %v2867_v44 }
 0x2c8   : > { %2708 = vmatpush3.bf16.msra.mxu0 %v2867_v44 }
 0x2c9   : > { %v2637_v41 = vpop.f32.mrf.mxu0 }
 0x2ca   : > { %v1362_v45 = vadd.f32 %v2637_v41, %v3639_v24 }
 0x2cb   : > { %v1353_v42 = vpop.f32.mrf.mxu0 }
 0x2cc   : > { %v1354_v39 = vadd.f32 %v3639_v24, %v1353_v42  ;;  %v1434_v4 = vmul.f32 %v1362_v45, %v1362_v45 }
 0x2cd   : > { %v2638_v61 = vpop.f32.mrf.mxu0 }
 0x2ce   : > { %v1365_v35 = vadd.f32 %v2638_v61, %v3639_v24  ;;  %v1432_v15 = vmul.f32 %v1354_v39, %v1354_v39 }
 0x2cf   : > { %v1356_v30 = vpop.f32.mrf.mxu0 }
 0x2d0   : > { %v1357_v34 = vadd.f32 %v3639_v24, %v1356_v30  ;;  %v1435_v22 = vmul.f32 %v1365_v35, %v1365_v35  ;;  %v2868_v35 = vld [vmem:[#allocation2 + $0x10] sm:$0xff]   ;;  %v2869_v30 = vld [vmem:[#allocation2 + $0x8] sm:$0xff]  }
 0x2d1   : > { %2709 = vmatprep.subr.bf16.mxu0 %v2868_v35 }
 0x2d2   : > { %v1433_v60 = vmul.f32 %v1357_v34, %v1357_v34  ;;  %v1457_v23 = vpack.c.bf16 %v1435_v22, %v1434_v4  ;;  %2710 = vmatpush3.bf16.msra.mxu0 %v2868_v35 }
 0x2d3   : > { %2711 = vmatprep.subr.bf16.mxu0 %v2869_v30 }
 0x2d4   : > { %v1456_v51 = vpack.c.bf16 %v1433_v60, %v1432_v15  ;;  %v2870_v15 = vld [vmem:[#allocation2] sm:$0xff]  }
 0x2d6   : > { %2683 = vmatprep.mubr.bf16.mxu1 %v1456_v51  ;;  %2712 = vmatpush3.bf16.msra.mxu0 %v2869_v30 }
 0x2d7   : > { %2684 = vmatmul.mubr.bf16.gmra.mxu1 %v1457_v23  ;;  %2713 = vmatprep.subr.bf16.mxu0 %v2870_v15 }
 0x2d9   : > { %v2641_v27 = vpop.f32.mrf.mxu0 }
 0x2da   : > { %v1378_v11 = vadd.f32 %v2641_v27, %v3639_v24  ;;  %2714 = vmatpush3.bf16.msra.mxu0 %v2870_v15  ;;  %v3678_v15 = vld [vmem:[%s3830_s8] ss:$0 sm:$0xff] }
 0x2db   : > { %v1369_v14 = vpop.f32.mrf.mxu0 }
 0x2dc   : > { %v1370_v6 = vadd.f32 %v3639_v24, %v1369_v14  ;;  %v1438_v42 = vmul.f32 %v1378_v11, %v1378_v11 }
 0x2dd   : > { %v2642_v56 = vpop.f32.mrf.mxu0 }
 0x2de   : > { %v1381_v31 = vadd.f32 %v2642_v56, %v3639_v24  ;;  %v1436_v40 = vmul.f32 %v1370_v6, %v1370_v6 }
 0x2df   : > { %v1372_v26 = vpop.f32.mrf.mxu0 }
 0x2e0   : > { %v1373_v1 = vadd.f32 %v3639_v24, %v1372_v26  ;;  %v1439_v19 = vmul.f32 %v1381_v31, %v1381_v31 }
 0x2e2   : > { %v1437_v41 = vmul.f32 %v1373_v1, %v1373_v1  ;;  %v1459_v39 = vpack.c.bf16 %v1439_v19, %v1438_v42 }
 0x2e4   : > { %v1458_v61 = vpack.c.bf16 %v1437_v41, %v1436_v40 }
 0x2e6   : > { %2687 = vmatprep.mubr.bf16.mxu1 %v1458_v61 }
 0x2e7   : > { %2688 = vmatmul.mubr.bf16.gmra.mxu1 %v1459_v39 }
 0x2e9   : > { %v2645_v45 = vpop.f32.mrf.mxu0 }
 0x2ea   : > { %v1394_v51 = vadd.f32 %v2645_v45, %v3639_v24 }
 0x2eb   : > { %v1385_v34 = vpop.f32.mrf.mxu0 }
 0x2ec   : > { %v1386_v60 = vadd.f32 %v3639_v24, %v1385_v34  ;;  %v1442_v56 = vmul.f32 %v1394_v51, %v1394_v51  ;;  %v3673_v34 = vpop.f32.mrf.mxu1 }
 0x2ed   : > { %v2646_v22 = vpop.f32.mrf.mxu0 }
 0x2ee   : > { %v1397_v4 = vadd.f32 %v2646_v22, %v3639_v24  ;;  %v1440_v57 = vmul.f32 %v1386_v60, %v1386_v60 }
 0x2ef   : > { %v1388_v23 = vpop.f32.mrf.mxu0 }
 0x2f0   : > { %v1389_v52 = vadd.f32 %v3639_v24, %v1388_v23  ;;  %v1443_v27 = vmul.f32 %v1397_v4, %v1397_v4 }
 0x2f2   : > { %v1441_v14 = vmul.f32 %v1389_v52, %v1389_v52  ;;  %v1461_v6 = vpack.c.bf16 %v1443_v27, %v1442_v56 }
 0x2f4   : > { %v1460_v5 = vpack.c.bf16 %v1441_v14, %v1440_v57 }
 0x2f6   : > { %2691 = vmatprep.mubr.bf16.mxu1 %v1460_v5 }
 0x2f7   : > { %2692 = vmatmul.mubr.bf16.gmra.mxu1 %v1461_v6 }
 0x2f9   : > { %v2649_v31 = vpop.f32.mrf.mxu0 }
 0x2fa   : > { %v1410_v44 = vadd.f32 %v2649_v31, %v3639_v24 }
 0x2fb   : > { %v1401_v11 = vpop.f32.mrf.mxu0 }
 0x2fc   : > { %v1402_v1 = vadd.f32 %v3639_v24, %v1401_v11  ;;  %v1446_v35 = vmul.f32 %v1410_v44, %v1410_v44 }
 0x2fd   : > { %v2650_v26 = vpop.f32.mrf.mxu0 }
 0x2fe   : > { %v1413_v19 = vadd.f32 %v2650_v26, %v3639_v24  ;;  %v1444_v61 = vmul.f32 %v1402_v1, %v1402_v1 }
 0x2ff   : > { %v1404_v40 = vpop.f32.mrf.mxu0 }
 0x300   : > { %v1405_v41 = vadd.f32 %v3639_v24, %v1404_v40  ;;  %v1447_v42 = vmul.f32 %v1413_v19, %v1413_v19 }
 0x302   : > { %v1445_v39 = vmul.f32 %v1405_v41, %v1405_v41  ;;  %v1463_v30 = vpack.c.bf16 %v1447_v42, %v1446_v35 }
 0x304   : > { %v1462_v45 = vpack.c.bf16 %v1445_v39, %v1444_v61 }
 0x306   : > { %2695 = vmatprep.mubr.bf16.mxu1 %v1462_v45 }
 0x307   : > { %2696 = vmatmul.mubr.bf16.gmra.mxu1 %v1463_v30 }
 0x357   : > { %v2669_v22 = vpop.f32.mrf.mxu1 }
 0x358   : > { %v1578_v24 = vadd.f32 %v2669_v22, %v3678_v15 }
 0x359   : > { %v1569_v60 = vpop.f32.mrf.mxu1 }
 0x35a   : > { %v1570_v4 = vadd.f32 %v3678_v15, %v1569_v60  ;;  %v1700_v56 = vmul.f32 1.442695, %v1578_v24 }
 0x35b   : > { %v2670_v51 = vpop.f32.mrf.mxu1 }
 0x35c   : > { %v1696_v23 = vmul.f32 1.442695, %v1570_v4  ;;  %v1581_v52 = vadd.f32 %v2670_v51, %v3678_v15 }
 0x35d   : > { %v1572_v27 = vpop.f32.mrf.mxu1 }
 0x35e   : > { %v1702_v57 = vmul.f32 1.442695, %v1581_v52  ;;  %v1573_v14 = vadd.f32 %v3678_v15, %v1572_v27  ;;  %2871 = vpow2.f32 %v1696_v23 }
 0x360   : > { %v1698_v5 = vmul.f32 1.442695, %v1573_v14  ;;  %2873 = vpow2.f32 %v1702_v57 }
 0x362   : > { %2875 = vpow2.f32 %v1698_v5 }
 0x363   : > { %2877 = vpow2.f32 %v1700_v56 }
 0x367   : > { %v2673_v6 = vpop.f32.mrf.mxu1 }
 0x368   : > { %v1594_v26 = vadd.f32 %v2673_v6, %v3678_v15 }
 0x369   : > { %v1585_v31 = vpop.f32.mrf.mxu1 }
 0x36a   : > { %v1586_v11 = vadd.f32 %v3678_v15, %v1585_v31  ;;  %v1708_v45 = vmul.f32 1.442695, %v1594_v26 }
 0x36b   : > { %v2674_v1 = vpop.f32.mrf.mxu1  ;;  %v2872_v40 = vpop.eup %2871 }
 0x36c   : > { %v1704_v19 = vmul.f32 1.442695, %v1586_v11  ;;  %v1597_v44 = vadd.f32 %v2674_v1, %v3678_v15 }
 0x36d   : > { %v1588_v41 = vpop.f32.mrf.mxu1  ;;  %v2874_v42 = vpop.eup %2873 }
 0x36e   : > { %v1710_v61 = vmul.f32 1.442695, %v1597_v44  ;;  %v1589_v39 = vadd.f32 %v3678_v15, %v1588_v41  ;;  %2879 = vpow2.f32 %v1704_v19 }
 0x36f   : > { %v2876_v35 = vpop.eup %2875 }
 0x370   : > { %v2878_v30 = vpop.eup %2877  ;;  %v1706_v22 = vmul.f32 1.442695, %v1589_v39  ;;  %v1760_v60 = vpack.c.bf16 %v2876_v35, %v2872_v40  ;;  %2881 = vpow2.f32 %v1710_v61 }
 0x371   : > { %v1761_v4 = vpack.c.bf16 %v2874_v42, %v2878_v30 }
 0x372   : > { %2883 = vpow2.f32 %v1706_v22  ;;  %2715 = vmatprep.mubr.bf16.mxu0 %v1760_v60 }
 0x373   : > { %2885 = vpow2.f32 %v1708_v45  ;;  %2716 = vmatmul.mubr.bf16.vlgmr.msra.gmra.mxu0 %v1761_v4 }
 0x377   : > { %v2677_v24 = vpop.f32.mrf.mxu1 }
 0x378   : > { %v1610_v52 = vadd.f32 %v2677_v24, %v3678_v15 }
 0x379   : > { %v1601_v51 = vpop.f32.mrf.mxu1 }
 0x37a   : > { %v1602_v23 = vadd.f32 %v3678_v15, %v1601_v51  ;;  %v1716_v1 = vmul.f32 1.442695, %v1610_v52 }
 0x37b   : > { %v2678_v27 = vpop.f32.mrf.mxu1  ;;  %v2880_v56 = vpop.eup %2879 }
 0x37c   : > { %v1712_v57 = vmul.f32 1.442695, %v1602_v23  ;;  %v1613_v14 = vadd.f32 %v2678_v27, %v3678_v15 }
 0x37d   : > { %v1604_v5 = vpop.f32.mrf.mxu1  ;;  %v2882_v6 = vpop.eup %2881 }
 0x37e   : > { %v1718_v31 = vmul.f32 1.442695, %v1613_v14  ;;  %v1605_v11 = vadd.f32 %v3678_v15, %v1604_v5  ;;  %2887 = vpow2.f32 %v1712_v57 }
 0x37f   : > { %v2884_v26 = vpop.eup %2883 }
 0x380   : > { %v2886_v19 = vpop.eup %2885  ;;  %v1714_v44 = vmul.f32 1.442695, %v1605_v11  ;;  %v1762_v40 = vpack.c.bf16 %v2884_v26, %v2880_v56  ;;  %2889 = vpow2.f32 %v1718_v31 }
 0x381   : > { %v1763_v41 = vpack.c.bf16 %v2882_v6, %v2886_v19 }
 0x382   : > { %2891 = vpow2.f32 %v1714_v44  ;;  %2719 = vmatprep.mubr.bf16.mxu0 %v1762_v40 }
 0x383   : > { %2893 = vpow2.f32 %v1716_v1  ;;  %2720 = vmatmul.mubr.bf16.gmra.mxu0 %v1763_v41 }
 0x387   : > { %v2681_v42 = vpop.f32.mrf.mxu1 }
 0x388   : > { %v1626_v35 = vadd.f32 %v2681_v42, %v3678_v15 }
 0x389   : > { %v1617_v61 = vpop.f32.mrf.mxu1 }
 0x38a   : > { %v1618_v39 = vadd.f32 %v3678_v15, %v1617_v61  ;;  %v1724_v27 = vmul.f32 1.442695, %v1626_v35 }
 0x38b   : > { %v2682_v45 = vpop.f32.mrf.mxu1  ;;  %v2888_v60 = vpop.eup %2887 }
 0x38c   : > { %v1720_v30 = vmul.f32 1.442695, %v1618_v39  ;;  %v1629_v22 = vadd.f32 %v2682_v45, %v3678_v15 }
 0x38d   : > { %v1620_v4 = vpop.f32.mrf.mxu1  ;;  %v2890_v24 = vpop.eup %2889 }
 0x38e   : > { %v1726_v51 = vmul.f32 1.442695, %v1629_v22  ;;  %v1621_v23 = vadd.f32 %v3678_v15, %v1620_v4  ;;  %2895 = vpow2.f32 %v1720_v30 }
 0x38f   : > { %v2892_v52 = vpop.eup %2891 }
 0x390   : > { %v2894_v57 = vpop.eup %2893  ;;  %v1722_v14 = vmul.f32 1.442695, %v1621_v23  ;;  %v1764_v56 = vpack.c.bf16 %v2892_v52, %v2888_v60  ;;  %2897 = vpow2.f32 %v1726_v51 }
 0x391   : > { %v1765_v5 = vpack.c.bf16 %v2890_v24, %v2894_v57 }
 0x392   : > { %2899 = vpow2.f32 %v1722_v14  ;;  %2723 = vmatprep.mubr.bf16.mxu0 %v1764_v56 }
 0x393   : > { %2901 = vpow2.f32 %v1724_v27  ;;  %2724 = vmatmul.mubr.bf16.gmra.mxu0 %v1765_v5 }
 0x397   : > { %v2685_v6 = vpop.f32.mrf.mxu1 }
 0x398   : > { %v1642_v26 = vadd.f32 %v2685_v6, %v3678_v15 }
 0x399   : > { %v1633_v31 = vpop.f32.mrf.mxu1 }
 0x39a   : > { %v1634_v11 = vadd.f32 %v3678_v15, %v1633_v31  ;;  %v1732_v45 = vmul.f32 1.442695, %v1642_v26 }
 0x39b   : > { %v2686_v1 = vpop.f32.mrf.mxu1  ;;  %v2896_v40 = vpop.eup %2895 }
 0x39c   : > { %v1728_v19 = vmul.f32 1.442695, %v1634_v11  ;;  %v1645_v44 = vadd.f32 %v2686_v1, %v3678_v15 }
 0x39d   : > { %v1636_v41 = vpop.f32.mrf.mxu1  ;;  %v2898_v42 = vpop.eup %2897 }
 0x39e   : > { %v1734_v61 = vmul.f32 1.442695, %v1645_v44  ;;  %v1637_v39 = vadd.f32 %v3678_v15, %v1636_v41  ;;  %2903 = vpow2.f32 %v1728_v19 }
 0x39f   : > { %v2900_v35 = vpop.eup %2899 }
 0x3a0   : > { %v2902_v30 = vpop.eup %2901  ;;  %v1730_v22 = vmul.f32 1.442695, %v1637_v39  ;;  %v1766_v60 = vpack.c.bf16 %v2900_v35, %v2896_v40  ;;  %2905 = vpow2.f32 %v1734_v61 }
 0x3a1   : > { %v1767_v4 = vpack.c.bf16 %v2898_v42, %v2902_v30 }
 0x3a2   : > { %2907 = vpow2.f32 %v1730_v22  ;;  %2727 = vmatprep.mubr.bf16.mxu0 %v1766_v60 }
 0x3a3   : > { %2909 = vpow2.f32 %v1732_v45  ;;  %2728 = vmatmul.mubr.bf16.gmra.mxu0 %v1767_v4 }
 0x3a7   : > { %v2689_v24 = vpop.f32.mrf.mxu1 }
 0x3a8   : > { %v1658_v52 = vadd.f32 %v2689_v24, %v3678_v15 }
 0x3a9   : > { %v1649_v51 = vpop.f32.mrf.mxu1 }
 0x3aa   : > { %v1650_v23 = vadd.f32 %v3678_v15, %v1649_v51  ;;  %v1740_v1 = vmul.f32 1.442695, %v1658_v52 }
 0x3ab   : > { %v2690_v27 = vpop.f32.mrf.mxu1  ;;  %v2904_v56 = vpop.eup %2903 }
 0x3ac   : > { %v1736_v57 = vmul.f32 1.442695, %v1650_v23  ;;  %v1661_v14 = vadd.f32 %v2690_v27, %v3678_v15 }
 0x3ad   : > { %v1652_v5 = vpop.f32.mrf.mxu1  ;;  %v2906_v6 = vpop.eup %2905 }
 0x3ae   : > { %v1742_v31 = vmul.f32 1.442695, %v1661_v14  ;;  %v1653_v11 = vadd.f32 %v3678_v15, %v1652_v5  ;;  %2911 = vpow2.f32 %v1736_v57 }
 0x3af   : > { %v2908_v26 = vpop.eup %2907 }
 0x3b0   : > { %v2910_v19 = vpop.eup %2909  ;;  %v1738_v44 = vmul.f32 1.442695, %v1653_v11  ;;  %v1768_v40 = vpack.c.bf16 %v2908_v26, %v2904_v56  ;;  %2913 = vpow2.f32 %v1742_v31 }
 0x3b1   : > { %v1769_v41 = vpack.c.bf16 %v2906_v6, %v2910_v19 }
 0x3b2   : > { %2915 = vpow2.f32 %v1738_v44  ;;  %2731 = vmatprep.mubr.bf16.mxu0 %v1768_v40 }
 0x3b3   : > { %2917 = vpow2.f32 %v1740_v1  ;;  %2732 = vmatmul.mubr.bf16.gmra.mxu0 %v1769_v41 }
 0x3b7   : > { %v2693_v42 = vpop.f32.mrf.mxu1 }
 0x3b8   : > { %v1674_v35 = vadd.f32 %v2693_v42, %v3678_v15 }
 0x3b9   : > { %v1665_v61 = vpop.f32.mrf.mxu1 }
 0x3ba   : > { %v1666_v39 = vadd.f32 %v3678_v15, %v1665_v61  ;;  %v1748_v27 = vmul.f32 1.442695, %v1674_v35 }
 0x3bb   : > { %v2694_v45 = vpop.f32.mrf.mxu1  ;;  %v2912_v60 = vpop.eup %2911 }
 0x3bc   : > { %v1744_v30 = vmul.f32 1.442695, %v1666_v39  ;;  %v1677_v22 = vadd.f32 %v2694_v45, %v3678_v15 }
 0x3bd   : > { %v1668_v4 = vpop.f32.mrf.mxu1  ;;  %v2914_v24 = vpop.eup %2913 }
 0x3be   : > { %v1750_v51 = vmul.f32 1.442695, %v1677_v22  ;;  %v1669_v23 = vadd.f32 %v3678_v15, %v1668_v4  ;;  %2919 = vpow2.f32 %v1744_v30 }
 0x3bf   : > { %v2916_v52 = vpop.eup %2915 }
 0x3c0   : > { %v2918_v57 = vpop.eup %2917  ;;  %v1746_v14 = vmul.f32 1.442695, %v1669_v23  ;;  %v1770_v56 = vpack.c.bf16 %v2916_v52, %v2912_v60  ;;  %2921 = vpow2.f32 %v1750_v51 }
 0x3c1   : > { %v1771_v5 = vpack.c.bf16 %v2914_v24, %v2918_v57 }
 0x3c2   : > { %2923 = vpow2.f32 %v1746_v14  ;;  %2735 = vmatprep.mubr.bf16.mxu0 %v1770_v56 }
 0x3c3   : > { %2925 = vpow2.f32 %v1748_v27  ;;  %2736 = vmatmul.mubr.bf16.gmra.mxu0 %v1771_v5 }
 0x3c7   : > { %v2697_v6 = vpop.f32.mrf.mxu1 }
 0x3c8   : > { %v1690_v26 = vadd.f32 %v2697_v6, %v3678_v15 }
 0x3c9   : > { %v1681_v31 = vpop.f32.mrf.mxu1 }
 0x3ca   : > { %v1682_v11 = vadd.f32 %v3678_v15, %v1681_v31  ;;  %v1756_v45 = vmul.f32 1.442695, %v1690_v26 }
 0x3cb   : > { %v2698_v1 = vpop.f32.mrf.mxu1  ;;  %v2920_v40 = vpop.eup %2919 }
 0x3cc   : > { %v1752_v19 = vmul.f32 1.442695, %v1682_v11  ;;  %v1693_v44 = vadd.f32 %v2698_v1, %v3678_v15 }
 0x3cd   : > { %v1684_v41 = vpop.f32.mrf.mxu1  ;;  %v2922_v42 = vpop.eup %2921 }
 0x3ce   : > { %v1758_v61 = vmul.f32 1.442695, %v1693_v44  ;;  %v1685_v39 = vadd.f32 %v3678_v15, %v1684_v41  ;;  %2927 = vpow2.f32 %v1752_v19 }
 0x3cf   : > { %v2924_v35 = vpop.eup %2923 }
 0x3d0   : > { %v2926_v30 = vpop.eup %2925  ;;  %v1754_v22 = vmul.f32 1.442695, %v1685_v39  ;;  %v1772_v60 = vpack.c.bf16 %v2924_v35, %v2920_v40  ;;  %2929 = vpow2.f32 %v1758_v61 }
 0x3d1   : > { %v1773_v4 = vpack.c.bf16 %v2922_v42, %v2926_v30 }
 0x3d2   : > { %2931 = vpow2.f32 %v1754_v22  ;;  %2739 = vmatprep.mubr.bf16.mxu0 %v1772_v60 }
 0x3d3   : > { %2933 = vpow2.f32 %v1756_v45  ;;  %2740 = vmatmul.mubr.bf16.gmra.mxu0 %v1773_v4 }
 0x3db   : > { %v2928_v24 = vpop.eup %2927 }
 0x3dd   : > { %v2930_v51 = vpop.eup %2929 }
 0x3df   : > { %v2932_v23 = vpop.eup %2931 }
 0x3e0   : > { %v2934_v52 = vpop.eup %2933  ;;  %v1774_v27 = vpack.c.bf16 %v2932_v23, %v2928_v24 }
 0x3e1   : > { %v1775_v15 = vpack.c.bf16 %v2930_v51, %v2934_v52 }
 0x3e2   : > { %2743 = vmatprep.mubr.bf16.mxu0 %v1774_v27 }
 0x3e3   : > { %2744 = vmatmul.mubr.bf16.gmra.mxu0 %v1775_v15 }
 0x433   : > { %v2717_v57 = vpop.f32.mrf.mxu0 }
 0x434   : > { %v2003_v5 = vadd.f32 %v2717_v57, %v3455_v50 }
 0x435   : > { %v1874_v14 = vpop.f32.mrf.mxu0 }
 0x436   : > { %v2001_v11 = vadd.f32 %v1874_v14, %v3437_v20 }
 0x437   : > { %v2718_v56 = vpop.f32.mrf.mxu0 }
 0x438   : > { %v2004_v6 = vadd.f32 %v2718_v56, %v3463_v10 }
 0x439   : > { %v1877_v31 = vpop.f32.mrf.mxu0 }
 0x43a   : > { %v2444_v26 = vpack.c.bf16 %v2004_v6, %v2003_v5  ;;  %v2002_v1 = vadd.f32 %v1877_v31, %v3445_v33 }
 0x43c   : > { %2516 = vst [vmem:[%s3719_s11 + $0x8] sm:$0xff] %v2444_v26   ;;  %v2439_v19 = vpack.c.bf16 %v2002_v1, %v2001_v11 }
 0x43e   : > { %2440 = vst [vmem:[%s3719_s11] sm:$0xff] %v2439_v19  }
 0x443   : > { %v2721_v44 = vpop.f32.mrf.mxu0 }
 0x444   : > { %v2007_v10 = vadd.f32 %v2721_v44, %v3482_v46 }
 0x445   : > { %v1890_v40 = vpop.f32.mrf.mxu0 }
 0x446   : > { %v2005_v33 = vadd.f32 %v1890_v40, %v3470_v17 }
 0x447   : > { %v2722_v50 = vpop.f32.mrf.mxu0 }
 0x448   : > { %v2008_v41 = vadd.f32 %v2722_v50, %v3487_v59 }
 0x449   : > { %v1893_v20 = vpop.f32.mrf.mxu0 }
 0x44a   : > { %v2454_v42 = vpack.c.bf16 %v2008_v41, %v2007_v10  ;;  %v2006_v61 = vadd.f32 %v1893_v20, %v3475_v29 }
 0x44c   : > { %2518 = vst [vmem:[%s3719_s11 + $0x18] sm:$0xff] %v2454_v42   ;;  %v2449_v39 = vpack.c.bf16 %v2006_v61, %v2005_v33 }
 0x44e   : > { %2517 = vst [vmem:[%s3719_s11 + $0x10] sm:$0xff] %v2449_v39  }
 0x453   : > { %v2725_v35 = vpop.f32.mrf.mxu0 }
 0x454   : > { %v2011_v22 = vadd.f32 %v2725_v35, %v3506_v28  ;;  %v1102_v35 = vadd.f32 %v3673_v34, %v3424_v0 }
 0x455   : > { %v1906_v45 = vpop.f32.mrf.mxu0 }
 0x456   : > { %v2009_v59 = vadd.f32 %v1906_v45, %v3494_v58 }
 0x457   : > { %v2726_v30 = vpop.f32.mrf.mxu0 }
 0x458   : > { %v2012_v46 = vadd.f32 %v2726_v30, %v3511_v53 }
 0x459   : > { %v1909_v60 = vpop.f32.mrf.mxu0 }
 0x45a   : > { %v2464_v4 = vpack.c.bf16 %v2012_v46, %v2011_v22  ;;  %v2010_v17 = vadd.f32 %v1909_v60, %v3499_v25 }
 0x45c   : > { %2520 = vst [vmem:[%s3719_s11 + $0x28] sm:$0xff] %v2464_v4   ;;  %v2459_v29 = vpack.c.bf16 %v2010_v17, %v2009_v59 }
 0x45e   : > { %2519 = vst [vmem:[%s3719_s11 + $0x20] sm:$0xff] %v2459_v29  }
 0x463   : > { %v2729_v24 = vpop.f32.mrf.mxu0 }
 0x464   : > { %v2015_v52 = vadd.f32 %v2729_v24, %v3530_v12 }
 0x465   : > { %v1922_v51 = vpop.f32.mrf.mxu0 }
 0x466   : > { %v2013_v53 = vadd.f32 %v1922_v51, %v3518_v8 }
 0x467   : > { %v2730_v23 = vpop.f32.mrf.mxu0 }
 0x468   : > { %v2016_v28 = vadd.f32 %v2730_v23, %v3535_v48 }
 0x469   : > { %v1925_v27 = vpop.f32.mrf.mxu0 }
 0x46a   : > { %v2474_v15 = vpack.c.bf16 %v2016_v28, %v2015_v52  ;;  %v2014_v58 = vadd.f32 %v1925_v27, %v3523_v21  ;;  %v1062_v21 = vadd.f32 %v3589_v63, %v3424_v0 }
 0x46c   : > { %2522 = vst [vmem:[%s3719_s11 + $0x38] sm:$0xff] %v2474_v15   ;;  %v2469_v25 = vpack.c.bf16 %v2014_v58, %v2013_v53 }
 0x46e   : > { %2521 = vst [vmem:[%s3719_s11 + $0x30] sm:$0xff] %v2469_v25  }
 0x473   : > { %v2733_v57 = vpop.f32.mrf.mxu0 }
 0x474   : > { %v2019_v5 = vadd.f32 %v2733_v57, %v3554_v18  ;;  %v713_v18 = vadd.f32 %v3634_v37, %v3418_v3 }
 0x475   : > { %v1938_v14 = vpop.f32.mrf.mxu0 }
 0x476   : > { %v2017_v48 = vadd.f32 %v1938_v14, %v3542_v9 }
 0x477   : > { %v2734_v56 = vpop.f32.mrf.mxu0 }
 0x478   : > { %v2020_v12 = vadd.f32 %v2734_v56, %v3559_v47  ;;  %v1159_v47 = vadd.f32 %v1062_v21, %v713_v18 }
 0x479   : > { %v1941_v6 = vpop.f32.mrf.mxu0 }
 0x47a   : > { %v2484_v31 = vpack.c.bf16 %v2020_v12, %v2019_v5  ;;  %v2018_v8 = vadd.f32 %v1941_v6, %v3547_v38 }
 0x47c   : > { %2524 = vst [vmem:[%s3719_s11 + $0x48] sm:$0xff] %v2484_v31   ;;  %v2479_v11 = vpack.c.bf16 %v2018_v8, %v2017_v48 }
 0x47e   : > { %2523 = vst [vmem:[%s3719_s11 + $0x40] sm:$0xff] %v2479_v11  }
 0x483   : > { %v2737_v26 = vpop.f32.mrf.mxu0 }
 0x484   : > { %v2023_v9 = vadd.f32 %v2737_v26, %v3587_v7 }
 0x485   : > { %v1954_v1 = vpop.f32.mrf.mxu0 }
 0x486   : > { %v2021_v38 = vadd.f32 %v1954_v1, %v3569_v54 }
 0x487   : > { %v2738_v19 = vpop.f32.mrf.mxu0 }
 0x488   : > { %v2024_v44 = vadd.f32 %v2738_v19, %v1159_v47 }
 0x489   : > { %v1957_v40 = vpop.f32.mrf.mxu0 }
 0x48a   : > { %v2494_v50 = vpack.c.bf16 %v2024_v44, %v2023_v9  ;;  %v2022_v10 = vadd.f32 %v1957_v40, %v3577_v13 }
 0x48c   : > { %2526 = vst [vmem:[%s3719_s11 + $0x58] sm:$0xff] %v2494_v50   ;;  %v2489_v63 = vpack.c.bf16 %v2022_v10, %v2021_v38 }
 0x48e   : > { %2525 = vst [vmem:[%s3719_s11 + $0x50] sm:$0xff] %v2489_v63  }
 0x493   : > { %v2741_v41 = vpop.f32.mrf.mxu0 }
 0x494   : > { %v2027_v33 = vadd.f32 %v2741_v41, %v3608_v36  ;;  %v753_v36 = vadd.f32 %v3415_v2, %v3418_v3 }
 0x495   : > { %v1970_v20 = vpop.f32.mrf.mxu0 }
 0x496   : > { %v2025_v61 = vadd.f32 %v1970_v20, %v3596_v49  ;;  %v1167_v30 = vadd.f32 %v1102_v35, %v753_v36 }
 0x497   : > { %v2742_v37 = vpop.f32.mrf.mxu0 }
 0x498   : > { %v2028_v42 = vadd.f32 %v2742_v37, %v3613_v55 }
 0x499   : > { %v1973_v7 = vpop.f32.mrf.mxu0 }
 0x49a   : > { %v2504_v54 = vpack.c.bf16 %v2028_v42, %v2027_v33  ;;  %v2026_v39 = vadd.f32 %v1973_v7, %v3601_v62 }
 0x49c   : > { %2528 = vst [vmem:[%s3719_s11 + $0x68] sm:$0xff] %v2504_v54   ;;  %v2499_v13 = vpack.c.bf16 %v2026_v39, %v2025_v61 }
 0x49e   : > { %2527 = vst [vmem:[%s3719_s11 + $0x60] sm:$0xff] %v2499_v13  }
 0x4a3   : > { %v2745_v45 = vpop.f32.mrf.mxu0 }
 0x4a4   : > { %v2031_v49 = vadd.f32 %v2745_v45, %v3632_v16 }
 0x4a5   : > { %v1986_v55 = vpop.f32.mrf.mxu0 }
 0x4a6   : > { %v2029_v60 = vadd.f32 %v1986_v55, %v3620_v43 }
 0x4a7   : > { %v2746_v22 = vpop.f32.mrf.mxu0 }
 0x4a8   : > { %v2032_v62 = vadd.f32 %v2746_v22, %v1167_v30 }
 0x4a9   : > { %v1989_v46 = vpop.f32.mrf.mxu0 }
 0x4aa   : > { %v2514_v0 = vpack.c.bf16 %v2032_v62, %v2031_v49  ;;  %v2030_v34 = vadd.f32 %v1989_v46, %v3625_v32 }
 0x4ac   : > { %2530 = vst [vmem:[%s3719_s11 + $0x78] sm:$0xff] %v2514_v0   ;;  %v2509_v2 = vpack.c.bf16 %v2030_v34, %v2029_v60 }
 0x4ae   : > { %2529 = vst [vmem:[%s3719_s11 + $0x70] sm:$0xff] %v2509_v2  }
 0x4af   : > { %2974 = shalt.err (!%p2971_p0)
}
 0x4b0   : > { %s2975_s29 = scalar_lea.hbm %s3774_s21, 2048  ;;  %s2979_s20 = scalar_lea.hbm %s3832_s10, 4096 }
 0x4b1   : > { %p2976_p1 = scmp.ne.s32.totalorder %s3774_s21, %s2975_s29  ;;  %p2980_p4 = scmp.lt.s32.totalorder %s3774_s21, %s3832_s10 }
 0x4b2   : > { %p2981_p7 = scmp.lt.s32.totalorder %s2979_s20, %s2975_s29 }
 0x4b3   : > { %p2977_p2 = pnand %p2976_p1, %p3127_p5 }
 0x4b4   : > { %p2982_p6 = por %p2981_p7, %p2980_p4 }
 0x4b5   : > { %p2978_p3 = pneg %p2977_p2 }
 0x4b7   : > { %p2983_p8 = pnand %p2982_p6, %p2978_p3 }
 0x4b9   : > { %2986 = shalt.err (!%p2983_p8)
}
 0x4ba   : > { %s3032_s26 = smov 64   ;;  %s3033_s28 = smov 4  }
 0x4bb   : > { %2753 = dma.vmem_to_hbm [thread:$0]  (%p3127_p5), %s3776_s18, 2048, %s3774_s21, %s3782_s17, %s3032_s26, %s3032_s26, %s3033_s28  }
 0x4bc PF: > { %p2765_p9 = scmp.ge.s32.totalorder %s3025_s16, 2  ;;  %s2222_s30 = sand.u32 1, %s3013_s13  }
 0x4bd   : > { %p3836_p10 = scmp.ne.s32.totalorder %s3834_s24, 0  ;;  %s2223_s29 = scalar_lea.sflag [#allocation4], %s2222_s30 }
 0x4bf   : > { %p2760_p11 = pnand %p2765_p9, %p3836_p10 }
 0x4c1   : > { %p2761_p12 = pneg %p2760_p11 }
 0x4c3   : > { %3008 = dma.done.wait (%p2761_p12), %s2223_s29, 2048  }
 0x4c4   : > { %3010 = vsyncadd (%p2761_p12), %s2223_s29, 4294965248  ;;  %p21_p13 = scmp.ge.s32.totalorder %s3114_s19, 4   ;;  %s3837_s13 = smov %s3017_s14 }
 0x4c5   : > { %s3838_s14 = smov %s3021_s15  ;;  %s3839_s15 = smov %s3125_s22 }
 0x4c6   : > { %s3840_s16 = smov %s3114_s19  ;;  %23 = sbr.rel (!%p21_p13) target bundleno = 4 (0x4), region = 100 }
 0x4cb   :  { %2228 = vsyncpa [#allocation3], 1 }
 0x4cc   :  { %2230 = vsyncpa [#allocation3 + $0x1], 1 }
 0x4cd   :  { %2231 = vsyncpa [#allocation4], 1 }
 0x4ce   :  { %2233 = vsyncpa [#allocation4 + $0x1], 1 }

</bundles_post_ra>
